<compile_context>
chip_gen: v5e
topology: v5e:2x2
jax: 0.10.0
libtpu: 0.0.40
codegen_flags: <defaults>
</compile_context>

<pallas_src>
import functools

import numpy as np
import jax
import jax.numpy as jnp
from jax import lax
from jax.experimental import pallas as pl
from jax.experimental.pallas import tpu as pltpu


def _round_up(x, m):
    return (x + m - 1) // m * m


_VMEM_LIMIT = 32 * 1024 * 1024   # safe on v5e/v6e/v7x; retune with row tiling.


# --------------------------- padded lane layout ------------------------------
# Activations are (N, C, Lp): channels in sublanes, the zero-bordered spatial
# image flattened row-major into lanes: (H+2) rows x (W+2) cols, zero-padded to
# Lp = round_up((H+2)*(W+2), 128).  Interior pixel (y, x) sits at lane
# (y+1)*(W+2) + (x+1).  Border / padding lanes are kept at zero so lane rolls
# by ±1 / ±(W+2) yield exactly the same-padded 3x3 neighborhood.

def to_padded_layout(x_nchw, dtype=jnp.bfloat16):
    N, C, H, W = x_nchw.shape
    Cp = _round_up(C, 8)                     # sublane-align channels
    Wp, Hp = W + 2, H + 2
    L = Hp * Wp
    Lp = _round_up(L, 128)
    x = jnp.pad(x_nchw, ((0, 0), (0, Cp - C), (1, 1), (1, 1)))
    x = x.reshape(N, Cp, L)
    x = jnp.pad(x, ((0, 0), (0, 0), (0, Lp - L)))
    return x.astype(dtype)


def from_padded_layout(x, H, W):
    N, C, _ = x.shape
    Wp, Hp = W + 2, H + 2
    x = x[:, :, : Hp * Wp].reshape(N, C, Hp, Wp)
    return x[:, :, 1:H + 1, 1:W + 1]


def _interior_mask(H, W, Lp):
    """(1, Lp) f32: 1 on interior pixels, 0 on the zero border / lane pad."""
    Wp = W + 2
    p = np.arange(Lp)
    row, col = p // Wp, p % Wp
    ok = (row >= 1) & (row <= H) & (col >= 1) & (col <= W) & (p < (H + 2) * Wp)
    return jnp.asarray(ok.astype(np.float32)[None, :])


# ------------------------------ Pallas kernels -------------------------------

def _conv3x3_compute(x_f32, w_bf16, b_f32, mask, Wp):
    """x_f32: (Cin, Lp); w_bf16: (Cout, 9*Cin) [tap order (dy, dx, cin)];
    b_f32: (Cout, 1); mask: (1, Lp).  Same-padded 3x3 cross-correlation
    (PyTorch Conv2d semantics) as one big-K im2col matmul; correctness of the
    rolls relies on the 1-px zero border baked into the lane layout."""
    L = x_f32.shape[-1]
    rows = []
    for dy in range(3):                       # 2 large row rolls (+ identity)
        sh = (-(dy - 1) * Wp) % L
        rows.append(x_f32 if sh == 0 else pltpu.roll(x_f32, sh, axis=1))
    taps = []
    for dy in range(3):                       # 6 lane-adjacent column rolls
        for dx in range(3):
            sh = (-(dx - 1)) % L
            taps.append(rows[dy] if sh == 0 else pltpu.roll(rows[dy], sh, axis=1))
    patches = jnp.concatenate(taps, axis=0).astype(jnp.bfloat16)   # (9*Cin, Lp)
    y = jnp.dot(w_bf16, patches, preferred_element_type=jnp.float32)
    return (y + b_f32) * mask                 # re-zero border & padding lanes


def _conv3x3_kernel(x_ref, w_ref, b_ref, m_ref, o_ref, *, Wp):
    x = x_ref[0].astype(jnp.float32)                              # (Cin, Lp)
    y = _conv3x3_compute(x, w_ref[...], b_ref[...], m_ref[...], Wp)
    o_ref[0] = y.astype(o_ref.dtype)


def _body_kernel(x_ref, w1_ref, b1_ref, w2_ref, b2_ref, w3_ref, b3_ref,
                 m_ref, o_ref, acc_ref, *, Wp):
    """One WideActivationBlock per step of grid axis 1.  The residual stream
    lives in f32 VMEM (acc_ref) for the whole body; HBM sees only the head
    output (read once) and the final body output (written once)."""
    blk = pl.program_id(1)

    @pl.when(blk == 0)
    def _():
        acc_ref[...] = x_ref[0].astype(jnp.float32)

    x = acc_ref[...]                                              # (F, Lp) f32
    mask = m_ref[...]
    h = jnp.dot(w1_ref[0], x.astype(jnp.bfloat16),
                preferred_element_type=jnp.float32) + b1_ref[0]   # expand 1x1
    h = jnp.maximum(h, 0.0)                                       # ReLU
    h = jnp.dot(w2_ref[0], h.astype(jnp.bfloat16),
                preferred_element_type=jnp.float32) + b2_ref[0]   # reduce 1x1
    h = h * mask                       # keep zero border for the 3x3 taps
    y = _conv3x3_compute(h, w3_ref[0], b3_ref[0], mask, Wp)       # conv 3x3
    acc_ref[...] = x + y                                          # residual

    @pl.when(blk == pl.num_programs(1) - 1)
    def _():
        o_ref[0] = acc_ref[...].astype(o_ref.dtype)


# -------------------------------- wrappers -----------------------------------

def conv3x3(x, w_packed, b_col, H, W):
    """x: (N, Cin, Lp) bf16 padded layout; w_packed: (Cout, 9*Cin) bf16;
    b_col: (Cout, 1) f32."""
    N, Cin, Lp = x.shape
    Cout = w_packed.shape[0]
    assert w_packed.shape[1] == 9 * Cin
    mask = _interior_mask(H, W, Lp)
    return pl.pallas_call(
        functools.partial(_conv3x3_kernel, Wp=W + 2),
        out_shape=jax.ShapeDtypeStruct((N, Cout, Lp), jnp.bfloat16),
        grid=(N,),
        in_specs=[
            pl.BlockSpec((1, Cin, Lp), lambda n: (n, 0, 0)),
            pl.BlockSpec((Cout, 9 * Cin), lambda n: (0, 0)),
            pl.BlockSpec((Cout, 1), lambda n: (0, 0)),
            pl.BlockSpec((1, Lp), lambda n: (0, 0)),
        ],
        out_specs=pl.BlockSpec((1, Cout, Lp), lambda n: (n, 0, 0)),
        compiler_params=pltpu.CompilerParams(
            dimension_semantics=("parallel",),
            vmem_limit_bytes=_VMEM_LIMIT),
    )(x, w_packed, b_col, mask)


def wdsr_body(x, body, H, W):
    """All WideActivationBlocks fused into one pallas_call."""
    N, F, Lp = x.shape
    B, mid, _ = body["w1s"].shape
    mask = _interior_mask(H, W, Lp)
    return pl.pallas_call(
        functools.partial(_body_kernel, Wp=W + 2),
        out_shape=jax.ShapeDtypeStruct((N, F, Lp), jnp.bfloat16),
        grid=(N, B),
        in_specs=[
            pl.BlockSpec((1, F, Lp), lambda n, b: (n, 0, 0)),     # head output
            pl.BlockSpec((1, mid, F), lambda n, b: (b, 0, 0)),    # w1[b]
            pl.BlockSpec((1, mid, 1), lambda n, b: (b, 0, 0)),    # b1[b]
            pl.BlockSpec((1, F, mid), lambda n, b: (b, 0, 0)),    # w2[b]
            pl.BlockSpec((1, F, 1), lambda n, b: (b, 0, 0)),      # b2[b]
            pl.BlockSpec((1, F, 9 * F), lambda n, b: (b, 0, 0)),  # w3[b]
            pl.BlockSpec((1, F, 1), lambda n, b: (b, 0, 0)),      # b3[b]
            pl.BlockSpec((1, Lp), lambda n, b: (0, 0)),           # interior mask
        ],
        out_specs=pl.BlockSpec((1, F, Lp), lambda n, b: (n, 0, 0)),
        scratch_shapes=[pltpu.VMEM((F, Lp), jnp.float32)],        # residual
        compiler_params=pltpu.CompilerParams(
            dimension_semantics=("parallel", "arbitrary"),
            vmem_limit_bytes=_VMEM_LIMIT),
    )(x, body["w1s"], body["b1s"], body["w2s"], body["b2s"],
      body["w3s"], body["b3s"], mask)


# ------------------------------ WDSR parameters ------------------------------

def init_params(key, in_channels, num_features, num_blocks, scale, expansion=6):
    mid = num_features * expansion

    def wconv(k, kh, kw, cin, cout):
        return 0.1 * jax.random.normal(k, (kh, kw, cin, cout), jnp.float32)

    keys = iter(jax.random.split(key, 4 + 6 * num_blocks + 8))
    p = {}
    p["head_w"] = wconv(next(keys), 3, 3, in_channels, num_features)
    p["head_b"] = 0.01 * jax.random.normal(next(keys), (num_features,), jnp.float32)
    p["blocks"] = []
    for _ in range(num_blocks):
        p["blocks"].append({
            "w1": 0.1 * jax.random.normal(next(keys), (num_features, mid), jnp.float32),
            "b1": 0.01 * jax.random.normal(next(keys), (mid,), jnp.float32),
            "w2": 0.1 * jax.random.normal(next(keys), (mid, num_features), jnp.float32),
            "b2": 0.01 * jax.random.normal(next(keys), (num_features,), jnp.float32),
            "w3": wconv(next(keys), 3, 3, num_features, num_features),
            "b3": 0.01 * jax.random.normal(next(keys), (num_features,), jnp.float32),
        })
    p["tail1_w"] = wconv(next(keys), 3, 3, num_features, num_features * scale * scale)
    p["tail1_b"] = 0.01 * jax.random.normal(next(keys), (num_features * scale * scale,), jnp.float32)
    p["tail2_w"] = wconv(next(keys), 3, 3, num_features, in_channels)
    p["tail2_b"] = 0.01 * jax.random.normal(next(keys), (in_channels,), jnp.float32)
    return p


def _pack_conv3(w_hwio):
    """(3,3,Cin,Cout) HWIO -> (Cout, 9*Cin) bf16, tap order (dy, dx, cin)."""
    cout = w_hwio.shape[-1]
    return jnp.transpose(w_hwio, (3, 0, 1, 2)).reshape(cout, -1).astype(jnp.bfloat16)


def prepare_params(p):
    """One-time device-layout prep: pack/transpose/stack/bf16-cast weights."""
    cin = p["head_w"].shape[2]
    cin_pad = _round_up(cin, 8)
    head_w = jnp.pad(p["head_w"], ((0, 0), (0, 0), (0, cin_pad - cin), (0, 0)))
    return {
        "head_w": _pack_conv3(head_w),
        "head_b": p["head_b"].reshape(-1, 1).astype(jnp.float32),
        "tail1_w": _pack_conv3(p["tail1_w"]),
        "tail1_b": p["tail1_b"].reshape(-1, 1).astype(jnp.float32),
        "tail2_w": _pack_conv3(p["tail2_w"]),
        "tail2_b": p["tail2_b"].reshape(-1, 1).astype(jnp.float32),
        "body": {
            "w1s": jnp.stack([b["w1"].T for b in p["blocks"]]).astype(jnp.bfloat16),
            "b1s": jnp.stack([b["b1"].reshape(-1, 1) for b in p["blocks"]]).astype(jnp.float32),
            "w2s": jnp.stack([b["w2"].T for b in p["blocks"]]).astype(jnp.bfloat16),
            "b2s": jnp.stack([b["b2"].reshape(-1, 1) for b in p["blocks"]]).astype(jnp.float32),
            "w3s": jnp.stack([_pack_conv3(b["w3"]) for b in p["blocks"]]),
            "b3s": jnp.stack([b["b3"].reshape(-1, 1) for b in p["blocks"]]).astype(jnp.float32),
        },
    }


# ------------------------------- forward pass --------------------------------

def wdsr_forward(dparams, x_nchw, scale):
    N, C, H, W = x_nchw.shape
    r = scale

    x = to_padded_layout(x_nchw)                                     # bf16
    x = conv3x3(x, dparams["head_w"], dparams["head_b"], H, W)       # head
    x = wdsr_body(x, dparams["body"], H, W)                          # fused body
    t = conv3x3(x, dparams["tail1_w"], dparams["tail1_b"], H, W)     # tail conv1

    # PixelShuffle (PyTorch NCHW semantics): pure layout permutation in XLA.
    # TODO(synk): fold this relayout into tail1's stores / tail2's index_map.
    t = from_padded_layout(t, H, W)                                  # (N, F*r*r, H, W)
    F = t.shape[1] // (r * r)
    t = t.reshape(N, F, r, r, H, W)
    t = jnp.transpose(t, (0, 1, 4, 2, 5, 3)).reshape(N, F, H * r, W * r)

    H2, W2 = H * r, W * r
    t = to_padded_layout(t)
    out = conv3x3(t, dparams["tail2_w"], dparams["tail2_b"], H2, W2)  # tail conv2
    out = from_padded_layout(out, H2, W2)
    return out.astype(jnp.float32)


# ---------------------------- pure-JAX reference -----------------------------

def pixel_shuffle_nhwc(x, r):
    N, H, W, C = x.shape
    F = C // (r * r)
    x = x.reshape(N, H, W, F, r, r)
    x = jnp.transpose(x, (0, 1, 4, 2, 5, 3))
    return x.reshape(N, H * r, W * r, F)


def _conv_ref(x, w, b, kh):
    pad = (kh - 1) // 2
    y = lax.conv_general_dilated(
        x, w, window_strides=(1, 1), padding=[(pad, pad), (pad, pad)],
        dimension_numbers=("NHWC", "HWIO", "NHWC"),
        precision=lax.Precision.HIGHEST)
    return y + b


def wdsr_reference(params, x_nchw, scale):
    x = jnp.transpose(x_nchw, (0, 2, 3, 1))
    x = _conv_ref(x, params["head_w"], params["head_b"], 3)
    for blk in params["blocks"]:
        h = _conv_ref(x, blk["w1"][None, None], blk["b1"], 1)
        h = jnp.maximum(h, 0.0)
        h = _conv_ref(h, blk["w2"][None, None], blk["b2"], 1)
        x = x + _conv_ref(h, blk["w3"], blk["b3"], 3)
    t = _conv_ref(x, params["tail1_w"], params["tail1_b"], 3)
    t = pixel_shuffle_nhwc(t, scale)
    out = _conv_ref(t, params["tail2_w"], params["tail2_b"], 3)
    return jnp.transpose(out, (0, 3, 1, 2))


# ----------------------------------- main ------------------------------------

if __name__ == "__main__":
    IN_CH, NUM_FEATURES, NUM_BLOCKS, SCALE = 3, 8, 2, 2
    N, H, W = 2, 8, 8

    key = jax.random.PRNGKey(0)
    kx, kp = jax.random.split(key)
    x = jax.random.normal(kx, (N, IN_CH, H, W), jnp.float32)    # NCHW input
    params = init_params(kp, IN_CH, NUM_FEATURES, NUM_BLOCKS, SCALE)
    dparams = prepare_params(params)                            # one-time prep

    fwd = jax.jit(functools.partial(wdsr_forward, scale=SCALE))
    y = jax.block_until_ready(fwd(dparams, x))

    assert y.shape == (N, IN_CH, H * SCALE, W * SCALE), y.shape

    y_ref = jax.block_until_ready(wdsr_reference(params, x, SCALE))
    err = float(jnp.max(jnp.abs(y - y_ref)))
    assert err < 5e-2, f"max abs error {err}"    # bf16 activation/weight path

    print("KERNEL_OK")
</pallas_src>

<mosaic_0001>
module attributes {stable_mosaic.version = 11 : i64} {
  func.func @_conv3x3_kernel(%arg0: i32, %arg1: memref<1x8x128xbf16, #tpu.memory_space<vmem>>, %arg2: memref<8x72xbf16, #tpu.memory_space<vmem>>, %arg3: memref<8x1xf32, #tpu.memory_space<vmem>>, %arg4: memref<1x128xf32, #tpu.memory_space<vmem>>, %arg5: memref<1x8x128xbf16, #tpu.memory_space<vmem>>) attributes {dimension_semantics = [#tpu.dimension_semantics<parallel>], iteration_bounds = array<i64: 2>, scalar_prefetch = 0 : i64, scratch_operands = 0 : i64, tpu.core_type = #tpu.core_type<tc>, window_params = [{transform_indices = @transform_0, window_bounds = array<i64: 1, 8, 128>}, {pipeline_mode = #tpu.pipeline_mode<synchronous>, transform_indices = @transform_1, window_bounds = array<i64: 8, 72>}, {pipeline_mode = #tpu.pipeline_mode<synchronous>, transform_indices = @transform_2, window_bounds = array<i64: 8, 1>}, {pipeline_mode = #tpu.pipeline_mode<synchronous>, transform_indices = @transform_3, window_bounds = array<i64: 1, 128>}, {transform_indices = @transform_4, window_bounds = array<i64: 1, 8, 128>}]} {
    %c0 = arith.constant 0 : index
    %c0_0 = arith.constant 0 : index
    %c0_1 = arith.constant 0 : index
    %0 = vector.load %arg1[%c0, %c0_0, %c0_1] : memref<1x8x128xbf16, #tpu.memory_space<vmem>>, vector<1x8x128xbf16>
    %1 = vector.shape_cast %0 : vector<1x8x128xbf16> to vector<8x128xbf16>
    %2 = arith.extf %1 : vector<8x128xbf16> to vector<8x128xf32>
    %c0_2 = arith.constant 0 : index
    %c0_3 = arith.constant 0 : index
    %3 = vector.load %arg2[%c0_2, %c0_3] : memref<8x72xbf16, #tpu.memory_space<vmem>>, vector<8x72xbf16>
    %c0_4 = arith.constant 0 : index
    %c0_5 = arith.constant 0 : index
    %4 = vector.load %arg3[%c0_4, %c0_5] : memref<8x1xf32, #tpu.memory_space<vmem>>, vector<8x1xf32>
    %c0_6 = arith.constant 0 : index
    %c0_7 = arith.constant 0 : index
    %5 = vector.load %arg4[%c0_6, %c0_7] : memref<1x128xf32, #tpu.memory_space<vmem>>, vector<1x128xf32>
    %c10_i32 = arith.constant 10 : i32
    %6 = tpu.dynamic_rotate %2 by %c10_i32 dim 1 : vector<8x128xf32>, i32 -> vector<8x128xf32>
    %c118_i32 = arith.constant 118 : i32
    %7 = tpu.dynamic_rotate %2 by %c118_i32 dim 1 : vector<8x128xf32>, i32 -> vector<8x128xf32>
    %c1_i32 = arith.constant 1 : i32
    %8 = tpu.dynamic_rotate %6 by %c1_i32 dim 1 : vector<8x128xf32>, i32 -> vector<8x128xf32>
    %c127_i32 = arith.constant 127 : i32
    %9 = tpu.dynamic_rotate %6 by %c127_i32 dim 1 : vector<8x128xf32>, i32 -> vector<8x128xf32>
    %c1_i32_8 = arith.constant 1 : i32
    %10 = tpu.dynamic_rotate %2 by %c1_i32_8 dim 1 : vector<8x128xf32>, i32 -> vector<8x128xf32>
    %c127_i32_9 = arith.constant 127 : i32
    %11 = tpu.dynamic_rotate %2 by %c127_i32_9 dim 1 : vector<8x128xf32>, i32 -> vector<8x128xf32>
    %c1_i32_10 = arith.constant 1 : i32
    %12 = tpu.dynamic_rotate %7 by %c1_i32_10 dim 1 : vector<8x128xf32>, i32 -> vector<8x128xf32>
    %c127_i32_11 = arith.constant 127 : i32
    %13 = tpu.dynamic_rotate %7 by %c127_i32_11 dim 1 : vector<8x128xf32>, i32 -> vector<8x128xf32>
    %14 = tpu.concatenate %8, %6, %9, %10, %2, %11, %12, %7, %13 in 0 : vector<8x128xf32>, vector<8x128xf32>, vector<8x128xf32>, vector<8x128xf32>, vector<8x128xf32>, vector<8x128xf32>, vector<8x128xf32>, vector<8x128xf32>, vector<8x128xf32> -> vector<72x128xf32>
    %15 = arith.truncf %14 : vector<72x128xf32> to vector<72x128xbf16>
    %cst = arith.constant dense<0.000000e+00> : vector<8x128xf32>
    %16 = tpu.matmul %3, %15, %cst {dimension_numbers = #tpu.dot_dimension_numbers<[1], [0], [0], [1], [0, 0, 1, 1], [], []>} : vector<8x72xbf16>, vector<72x128xbf16>, vector<8x128xf32> -> vector<8x128xf32>
    %17 = vector.broadcast %4 : vector<8x1xf32> to vector<8x128xf32>
    %18 = arith.addf %16, %17 : vector<8x128xf32>
    %19 = vector.broadcast %5 : vector<1x128xf32> to vector<8x128xf32>
    %20 = arith.mulf %18, %19 : vector<8x128xf32>
    %21 = arith.truncf %20 : vector<8x128xf32> to vector<8x128xbf16>
    %c0_12 = arith.constant 0 : index
    %c0_13 = arith.constant 0 : index
    %c0_14 = arith.constant 0 : index
    %22 = vector.load %arg5[%c0_12, %c0_13, %c0_14] : memref<1x8x128xbf16, #tpu.memory_space<vmem>>, vector<1x8x128xbf16>
    %23 = vector.shape_cast %22 : vector<1x8x128xbf16> to vector<8x128xbf16>
    %24 = vector.shape_cast %21 : vector<8x128xbf16> to vector<1x8x128xbf16>
    tpu.vector_store %arg5[%c0_12, %c0_13, %c0_14], %24 {strides = array<i32>} : memref<1x8x128xbf16, #tpu.memory_space<vmem>>, vector<1x8x128xbf16>,
    return
  }
  func.func @transform_0(%arg0: i32) -> (i32, i32, i32) {
    %c0_i32 = arith.constant 0 : i32
    %c0_i32_0 = arith.constant 0 : i32
    %c0_i32_1 = arith.constant 0 : i32
    return %arg0, %c0_i32, %c0_i32_0 : i32, i32, i32
  }
  func.func @transform_1(%arg0: i32) -> (i32, i32) {
    %c0_i32 = arith.constant 0 : i32
    %c0_i32_0 = arith.constant 0 : i32
    %c0_i32_1 = arith.constant 0 : i32
    return %c0_i32, %c0_i32_0 : i32, i32
  }
  func.func @transform_2(%arg0: i32) -> (i32, i32) {
    %c0_i32 = arith.constant 0 : i32
    %c0_i32_0 = arith.constant 0 : i32
    %c0_i32_1 = arith.constant 0 : i32
    return %c0_i32, %c0_i32_0 : i32, i32
  }
  func.func @transform_3(%arg0: i32) -> (i32, i32) {
    %c0_i32 = arith.constant 0 : i32
    %c0_i32_0 = arith.constant 0 : i32
    %c0_i32_1 = arith.constant 0 : i32
    return %c0_i32, %c0_i32_0 : i32, i32
  }
  func.func @transform_4(%arg0: i32) -> (i32, i32, i32) {
    %c0_i32 = arith.constant 0 : i32
    %c0_i32_0 = arith.constant 0 : i32
    %c0_i32_1 = arith.constant 0 : i32
    return %arg0, %c0_i32, %c0_i32_0 : i32, i32, i32
  }
}

module attributes {stable_mosaic.version = 11 : i64} {
  func.func @_conv3x3_kernel(%arg0: i32, %arg1: memref<1x8x128xbf16, #tpu.memory_space<vmem>>, %arg2: memref<32x72xbf16, #tpu.memory_space<vmem>>, %arg3: memref<32x1xf32, #tpu.memory_space<vmem>>, %arg4: memref<1x128xf32, #tpu.memory_space<vmem>>, %arg5: memref<1x32x128xbf16, #tpu.memory_space<vmem>>) attributes {dimension_semantics = [#tpu.dimension_semantics<parallel>], iteration_bounds = array<i64: 2>, scalar_prefetch = 0 : i64, scratch_operands = 0 : i64, tpu.core_type = #tpu.core_type<tc>, window_params = [{transform_indices = @transform_0, window_bounds = array<i64: 1, 8, 128>}, {pipeline_mode = #tpu.pipeline_mode<synchronous>, transform_indices = @transform_1, window_bounds = array<i64: 32, 72>}, {pipeline_mode = #tpu.pipeline_mode<synchronous>, transform_indices = @transform_2, window_bounds = array<i64: 32, 1>}, {pipeline_mode = #tpu.pipeline_mode<synchronous>, transform_indices = @transform_3, window_bounds = array<i64: 1, 128>}, {transform_indices = @transform_4, window_bounds = array<i64: 1, 32, 128>}]} {
    %c0 = arith.constant 0 : index
    %c0_0 = arith.constant 0 : index
    %c0_1 = arith.constant 0 : index
    %0 = vector.load %arg1[%c0, %c0_0, %c0_1] : memref<1x8x128xbf16, #tpu.memory_space<vmem>>, vector<1x8x128xbf16>
    %1 = vector.shape_cast %0 : vector<1x8x128xbf16> to vector<8x128xbf16>
    %2 = arith.extf %1 : vector<8x128xbf16> to vector<8x128xf32>
    %c0_2 = arith.constant 0 : index
    %c0_3 = arith.constant 0 : index
    %3 = vector.load %arg2[%c0_2, %c0_3] : memref<32x72xbf16, #tpu.memory_space<vmem>>, vector<32x72xbf16>
    %c0_4 = arith.constant 0 : index
    %c0_5 = arith.constant 0 : index
    %4 = vector.load %arg3[%c0_4, %c0_5] : memref<32x1xf32, #tpu.memory_space<vmem>>, vector<32x1xf32>
    %c0_6 = arith.constant 0 : index
    %c0_7 = arith.constant 0 : index
    %5 = vector.load %arg4[%c0_6, %c0_7] : memref<1x128xf32, #tpu.memory_space<vmem>>, vector<1x128xf32>
    %c10_i32 = arith.constant 10 : i32
    %6 = tpu.dynamic_rotate %2 by %c10_i32 dim 1 : vector<8x128xf32>, i32 -> vector<8x128xf32>
    %c118_i32 = arith.constant 118 : i32
    %7 = tpu.dynamic_rotate %2 by %c118_i32 dim 1 : vector<8x128xf32>, i32 -> vector<8x128xf32>
    %c1_i32 = arith.constant 1 : i32
    %8 = tpu.dynamic_rotate %6 by %c1_i32 dim 1 : vector<8x128xf32>, i32 -> vector<8x128xf32>
    %c127_i32 = arith.constant 127 : i32
    %9 = tpu.dynamic_rotate %6 by %c127_i32 dim 1 : vector<8x128xf32>, i32 -> vector<8x128xf32>
    %c1_i32_8 = arith.constant 1 : i32
    %10 = tpu.dynamic_rotate %2 by %c1_i32_8 dim 1 : vector<8x128xf32>, i32 -> vector<8x128xf32>
    %c127_i32_9 = arith.constant 127 : i32
    %11 = tpu.dynamic_rotate %2 by %c127_i32_9 dim 1 : vector<8x128xf32>, i32 -> vector<8x128xf32>
    %c1_i32_10 = arith.constant 1 : i32
    %12 = tpu.dynamic_rotate %7 by %c1_i32_10 dim 1 : vector<8x128xf32>, i32 -> vector<8x128xf32>
    %c127_i32_11 = arith.constant 127 : i32
    %13 = tpu.dynamic_rotate %7 by %c127_i32_11 dim 1 : vector<8x128xf32>, i32 -> vector<8x128xf32>
    %14 = tpu.concatenate %8, %6, %9, %10, %2, %11, %12, %7, %13 in 0 : vector<8x128xf32>, vector<8x128xf32>, vector<8x128xf32>, vector<8x128xf32>, vector<8x128xf32>, vector<8x128xf32>, vector<8x128xf32>, vector<8x128xf32>, vector<8x128xf32> -> vector<72x128xf32>
    %15 = arith.truncf %14 : vector<72x128xf32> to vector<72x128xbf16>
    %cst = arith.constant dense<0.000000e+00> : vector<32x128xf32>
    %16 = tpu.matmul %3, %15, %cst {dimension_numbers = #tpu.dot_dimension_numbers<[1], [0], [0], [1], [0, 0, 1, 1], [], []>} : vector<32x72xbf16>, vector<72x128xbf16>, vector<32x128xf32> -> vector<32x128xf32>
    %17 = vector.broadcast %4 : vector<32x1xf32> to vector<32x128xf32>
    %18 = arith.addf %16, %17 : vector<32x128xf32>
    %19 = vector.broadcast %5 : vector<1x128xf32> to vector<32x128xf32>
    %20 = arith.mulf %18, %19 : vector<32x128xf32>
    %21 = arith.truncf %20 : vector<32x128xf32> to vector<32x128xbf16>
    %c0_12 = arith.constant 0 : index
    %c0_13 = arith.constant 0 : index
    %c0_14 = arith.constant 0 : index
    %22 = vector.load %arg5[%c0_12, %c0_13, %c0_14] : memref<1x32x128xbf16, #tpu.memory_space<vmem>>, vector<1x32x128xbf16>
    %23 = vector.shape_cast %22 : vector<1x32x128xbf16> to vector<32x128xbf16>
    %24 = vector.shape_cast %21 : vector<32x128xbf16> to vector<1x32x128xbf16>
    tpu.vector_store %arg5[%c0_12, %c0_13, %c0_14], %24 {strides = array<i32>} : memref<1x32x128xbf16, #tpu.memory_space<vmem>>, vector<1x32x128xbf16>,
    return
  }
  func.func @transform_0(%arg0: i32) -> (i32, i32, i32) {
    %c0_i32 = arith.constant 0 : i32
    %c0_i32_0 = arith.constant 0 : i32
    %c0_i32_1 = arith.constant 0 : i32
    return %arg0, %c0_i32, %c0_i32_0 : i32, i32, i32
  }
  func.func @transform_1(%arg0: i32) -> (i32, i32) {
    %c0_i32 = arith.constant 0 : i32
    %c0_i32_0 = arith.constant 0 : i32
    %c0_i32_1 = arith.constant 0 : i32
    return %c0_i32, %c0_i32_0 : i32, i32
  }
  func.func @transform_2(%arg0: i32) -> (i32, i32) {
    %c0_i32 = arith.constant 0 : i32
    %c0_i32_0 = arith.constant 0 : i32
    %c0_i32_1 = arith.constant 0 : i32
    return %c0_i32, %c0_i32_0 : i32, i32
  }
  func.func @transform_3(%arg0: i32) -> (i32, i32) {
    %c0_i32 = arith.constant 0 : i32
    %c0_i32_0 = arith.constant 0 : i32
    %c0_i32_1 = arith.constant 0 : i32
    return %c0_i32, %c0_i32_0 : i32, i32
  }
  func.func @transform_4(%arg0: i32) -> (i32, i32, i32) {
    %c0_i32 = arith.constant 0 : i32
    %c0_i32_0 = arith.constant 0 : i32
    %c0_i32_1 = arith.constant 0 : i32
    return %arg0, %c0_i32, %c0_i32_0 : i32, i32, i32
  }
}

module attributes {stable_mosaic.version = 11 : i64} {
  func.func @_body_kernel(%arg0: i32, %arg1: i32, %arg2: memref<1x8x128xbf16, #tpu.memory_space<vmem>>, %arg3: memref<1x48x8xbf16, #tpu.memory_space<vmem>>, %arg4: memref<1x48x1xf32, #tpu.memory_space<vmem>>, %arg5: memref<1x8x48xbf16, #tpu.memory_space<vmem>>, %arg6: memref<1x8x1xf32, #tpu.memory_space<vmem>>, %arg7: memref<1x8x72xbf16, #tpu.memory_space<vmem>>, %arg8: memref<1x8x1xf32, #tpu.memory_space<vmem>>, %arg9: memref<1x128xf32, #tpu.memory_space<vmem>>, %arg10: memref<1x8x128xbf16, #tpu.memory_space<vmem>>, %arg11: memref<8x128xf32, #tpu.memory_space<vmem>>) attributes {dimension_semantics = [#tpu.dimension_semantics<parallel>, #tpu.dimension_semantics<arbitrary>], iteration_bounds = array<i64: 2, 2>, scalar_prefetch = 0 : i64, scratch_operands = 1 : i64, tpu.core_type = #tpu.core_type<tc>, window_params = [{transform_indices = @transform_0, window_bounds = array<i64: 1, 8, 128>}, {transform_indices = @transform_1, window_bounds = array<i64: 1, 48, 8>}, {transform_indices = @transform_2, window_bounds = array<i64: 1, 48, 1>}, {transform_indices = @transform_3, window_bounds = array<i64: 1, 8, 48>}, {transform_indices = @transform_4, window_bounds = array<i64: 1, 8, 1>}, {transform_indices = @transform_5, window_bounds = array<i64: 1, 8, 72>}, {transform_indices = @transform_6, window_bounds = array<i64: 1, 8, 1>}, {pipeline_mode = #tpu.pipeline_mode<synchronous>, transform_indices = @transform_7, window_bounds = array<i64: 1, 128>}, {transform_indices = @transform_8, window_bounds = array<i64: 1, 8, 128>}]} {
    %c0_i32 = arith.constant 0 : i32
    %0 = arith.cmpi eq, %arg1, %c0_i32 : i32
    %1 = arith.extui %0 : i1 to i32
    %c0_i32_0 = arith.constant 0 : i32
    %2 = arith.cmpi ne, %1, %c0_i32_0 : i32
    scf.if %2 {
      %c0_33 = arith.constant 0 : index
      %c0_34 = arith.constant 0 : index
      %c0_35 = arith.constant 0 : index
      %49 = vector.load %arg2[%c0_33, %c0_34, %c0_35] : memref<1x8x128xbf16, #tpu.memory_space<vmem>>, vector<1x8x128xbf16>
      %50 = vector.shape_cast %49 : vector<1x8x128xbf16> to vector<8x128xbf16>
      %51 = arith.extf %50 : vector<8x128xbf16> to vector<8x128xf32>
      %c0_36 = arith.constant 0 : index
      %c0_37 = arith.constant 0 : index
      %52 = vector.load %arg11[%c0_36, %c0_37] : memref<8x128xf32, #tpu.memory_space<vmem>>, vector<8x128xf32>
      tpu.vector_store %arg11[%c0_36, %c0_37], %51 {strides = array<i32>} : memref<8x128xf32, #tpu.memory_space<vmem>>, vector<8x128xf32>,
    } else {
    }
    %c0 = arith.constant 0 : index
    %c0_1 = arith.constant 0 : index
    %3 = vector.load %arg11[%c0, %c0_1] : memref<8x128xf32, #tpu.memory_space<vmem>>, vector<8x128xf32>
    %c0_2 = arith.constant 0 : index
    %c0_3 = arith.constant 0 : index
    %4 = vector.load %arg9[%c0_2, %c0_3] : memref<1x128xf32, #tpu.memory_space<vmem>>, vector<1x128xf32>
    %c0_4 = arith.constant 0 : index
    %c0_5 = arith.constant 0 : index
    %c0_6 = arith.constant 0 : index
    %5 = vector.load %arg3[%c0_4, %c0_5, %c0_6] : memref<1x48x8xbf16, #tpu.memory_space<vmem>>, vector<1x48x8xbf16>
    %6 = vector.shape_cast %5 : vector<1x48x8xbf16> to vector<48x8xbf16>
    %7 = arith.truncf %3 : vector<8x128xf32> to vector<8x128xbf16>
    %cst = arith.constant dense<0.000000e+00> : vector<48x128xf32>
    %8 = tpu.matmul %6, %7, %cst {dimension_numbers = #tpu.dot_dimension_numbers<[1], [0], [0], [1], [0, 0, 1, 1], [], []>} : vector<48x8xbf16>, vector<8x128xbf16>, vector<48x128xf32> -> vector<48x128xf32>
    %c0_7 = arith.constant 0 : index
    %c0_8 = arith.constant 0 : index
    %c0_9 = arith.constant 0 : index
    %9 = vector.load %arg4[%c0_7, %c0_8, %c0_9] : memref<1x48x1xf32, #tpu.memory_space<vmem>>, vector<1x48x1xf32>
    %10 = vector.shape_cast %9 : vector<1x48x1xf32> to vector<48x1xf32>
    %11 = vector.broadcast %10 : vector<48x1xf32> to vector<48x128xf32>
    %12 = arith.addf %8, %11 : vector<48x128xf32>
    %cst_10 = arith.constant 0.000000e+00 : f32
    %13 = vector.broadcast %cst_10 : f32 to vector<48x128xf32>
    %14 = arith.maximumf %12, %13 : vector<48x128xf32>
    %c0_11 = arith.constant 0 : index
    %c0_12 = arith.constant 0 : index
    %c0_13 = arith.constant 0 : index
    %15 = vector.load %arg5[%c0_11, %c0_12, %c0_13] : memref<1x8x48xbf16, #tpu.memory_space<vmem>>, vector<1x8x48xbf16>
    %16 = vector.shape_cast %15 : vector<1x8x48xbf16> to vector<8x48xbf16>
    %17 = arith.truncf %14 : vector<48x128xf32> to vector<48x128xbf16>
    %cst_14 = arith.constant dense<0.000000e+00> : vector<8x128xf32>
    %18 = tpu.matmul %16, %17, %cst_14 {dimension_numbers = #tpu.dot_dimension_numbers<[1], [0], [0], [1], [0, 0, 1, 1], [], []>} : vector<8x48xbf16>, vector<48x128xbf16>, vector<8x128xf32> -> vector<8x128xf32>
    %c0_15 = arith.constant 0 : index
    %c0_16 = arith.constant 0 : index
    %c0_17 = arith.constant 0 : index
    %19 = vector.load %arg6[%c0_15, %c0_16, %c0_17] : memref<1x8x1xf32, #tpu.memory_space<vmem>>, vector<1x8x1xf32>
    %20 = vector.shape_cast %19 : vector<1x8x1xf32> to vector<8x1xf32>
    %21 = vector.broadcast %20 : vector<8x1xf32> to vector<8x128xf32>
    %22 = arith.addf %18, %21 : vector<8x128xf32>
    %23 = vector.broadcast %4 : vector<1x128xf32> to vector<8x128xf32>
    %24 = arith.mulf %22, %23 : vector<8x128xf32>
    %c0_18 = arith.constant 0 : index
    %c0_19 = arith.constant 0 : index
    %c0_20 = arith.constant 0 : index
    %25 = vector.load %arg7[%c0_18, %c0_19, %c0_20] : memref<1x8x72xbf16, #tpu.memory_space<vmem>>, vector<1x8x72xbf16>
    %26 = vector.shape_cast %25 : vector<1x8x72xbf16> to vector<8x72xbf16>
    %c0_21 = arith.constant 0 : index
    %c0_22 = arith.constant 0 : index
    %c0_23 = arith.constant 0 : index
    %27 = vector.load %arg8[%c0_21, %c0_22, %c0_23] : memref<1x8x1xf32, #tpu.memory_space<vmem>>, vector<1x8x1xf32>
    %28 = vector.shape_cast %27 : vector<1x8x1xf32> to vector<8x1xf32>
    %c10_i32 = arith.constant 10 : i32
    %29 = tpu.dynamic_rotate %24 by %c10_i32 dim 1 : vector<8x128xf32>, i32 -> vector<8x128xf32>
    %c118_i32 = arith.constant 118 : i32
    %30 = tpu.dynamic_rotate %24 by %c118_i32 dim 1 : vector<8x128xf32>, i32 -> vector<8x128xf32>
    %c1_i32 = arith.constant 1 : i32
    %31 = tpu.dynamic_rotate %29 by %c1_i32 dim 1 : vector<8x128xf32>, i32 -> vector<8x128xf32>
    %c127_i32 = arith.constant 127 : i32
    %32 = tpu.dynamic_rotate %29 by %c127_i32 dim 1 : vector<8x128xf32>, i32 -> vector<8x128xf32>
    %c1_i32_24 = arith.constant 1 : i32
    %33 = tpu.dynamic_rotate %24 by %c1_i32_24 dim 1 : vector<8x128xf32>, i32 -> vector<8x128xf32>
    %c127_i32_25 = arith.constant 127 : i32
    %34 = tpu.dynamic_rotate %24 by %c127_i32_25 dim 1 : vector<8x128xf32>, i32 -> vector<8x128xf32>
    %c1_i32_26 = arith.constant 1 : i32
    %35 = tpu.dynamic_rotate %30 by %c1_i32_26 dim 1 : vector<8x128xf32>, i32 -> vector<8x128xf32>
    %c127_i32_27 = arith.constant 127 : i32
    %36 = tpu.dynamic_rotate %30 by %c127_i32_27 dim 1 : vector<8x128xf32>, i32 -> vector<8x128xf32>
    %37 = tpu.concatenate %31, %29, %32, %33, %24, %34, %35, %30, %36 in 0 : vector<8x128xf32>, vector<8x128xf32>, vector<8x128xf32>, vector<8x128xf32>, vector<8x128xf32>, vector<8x128xf32>, vector<8x128xf32>, vector<8x128xf32>, vector<8x128xf32> -> vector<72x128xf32>
    %38 = arith.truncf %37 : vector<72x128xf32> to vector<72x128xbf16>
    %cst_28 = arith.constant dense<0.000000e+00> : vector<8x128xf32>
    %39 = tpu.matmul %26, %38, %cst_28 {dimension_numbers = #tpu.dot_dimension_numbers<[1], [0], [0], [1], [0, 0, 1, 1], [], []>} : vector<8x72xbf16>, vector<72x128xbf16>, vector<8x128xf32> -> vector<8x128xf32>
    %40 = vector.broadcast %28 : vector<8x1xf32> to vector<8x128xf32>
    %41 = arith.addf %39, %40 : vector<8x128xf32>
    %42 = vector.broadcast %4 : vector<1x128xf32> to vector<8x128xf32>
    %43 = arith.mulf %41, %42 : vector<8x128xf32>
    %44 = arith.addf %3, %43 : vector<8x128xf32>
    %c0_29 = arith.constant 0 : index
    %c0_30 = arith.constant 0 : index
    %45 = vector.load %arg11[%c0_29, %c0_30] : memref<8x128xf32, #tpu.memory_space<vmem>>, vector<8x128xf32>
    tpu.vector_store %arg11[%c0_29, %c0_30], %44 {strides = array<i32>} : memref<8x128xf32, #tpu.memory_space<vmem>>, vector<8x128xf32>,
    %c1_i32_31 = arith.constant 1 : i32
    %46 = arith.cmpi eq, %arg1, %c1_i32_31 : i32
    %47 = arith.extui %46 : i1 to i32
    %c0_i32_32 = arith.constant 0 : i32
    %48 = arith.cmpi ne, %47, %c0_i32_32 : i32
    scf.if %48 {
      %c0_33 = arith.constant 0 : index
      %c0_34 = arith.constant 0 : index
      %49 = vector.load %arg11[%c0_33, %c0_34] : memref<8x128xf32, #tpu.memory_space<vmem>>, vector<8x128xf32>
      %50 = arith.truncf %49 : vector<8x128xf32> to vector<8x128xbf16>
      %c0_35 = arith.constant 0 : index
      %c0_36 = arith.constant 0 : index
      %c0_37 = arith.constant 0 : index
      %51 = vector.load %arg10[%c0_35, %c0_36, %c0_37] : memref<1x8x128xbf16, #tpu.memory_space<vmem>>, vector<1x8x128xbf16>
      %52 = vector.shape_cast %51 : vector<1x8x128xbf16> to vector<8x128xbf16>
      %53 = vector.shape_cast %50 : vector<8x128xbf16> to vector<1x8x128xbf16>
      tpu.vector_store %arg10[%c0_35, %c0_36, %c0_37], %53 {strides = array<i32>} : memref<1x8x128xbf16, #tpu.memory_space<vmem>>, vector<1x8x128xbf16>,
    } else {
    }
    return
  }
  func.func @transform_0(%arg0: i32, %arg1: i32) -> (i32, i32, i32) {
    %c0_i32 = arith.constant 0 : i32
    %c0_i32_0 = arith.constant 0 : i32
    %c0_i32_1 = arith.constant 0 : i32
    return %arg0, %c0_i32, %c0_i32_0 : i32, i32, i32
  }
  func.func @transform_1(%arg0: i32, %arg1: i32) -> (i32, i32, i32) {
    %c0_i32 = arith.constant 0 : i32
    %c0_i32_0 = arith.constant 0 : i32
    %c0_i32_1 = arith.constant 0 : i32
    return %arg1, %c0_i32, %c0_i32_0 : i32, i32, i32
  }
  func.func @transform_2(%arg0: i32, %arg1: i32) -> (i32, i32, i32) {
    %c0_i32 = arith.constant 0 : i32
    %c0_i32_0 = arith.constant 0 : i32
    %c0_i32_1 = arith.constant 0 : i32
    return %arg1, %c0_i32, %c0_i32_0 : i32, i32, i32
  }
  func.func @transform_3(%arg0: i32, %arg1: i32) -> (i32, i32, i32) {
    %c0_i32 = arith.constant 0 : i32
    %c0_i32_0 = arith.constant 0 : i32
    %c0_i32_1 = arith.constant 0 : i32
    return %arg1, %c0_i32, %c0_i32_0 : i32, i32, i32
  }
  func.func @transform_4(%arg0: i32, %arg1: i32) -> (i32, i32, i32) {
    %c0_i32 = arith.constant 0 : i32
    %c0_i32_0 = arith.constant 0 : i32
    %c0_i32_1 = arith.constant 0 : i32
    return %arg1, %c0_i32, %c0_i32_0 : i32, i32, i32
  }
  func.func @transform_5(%arg0: i32, %arg1: i32) -> (i32, i32, i32) {
    %c0_i32 = arith.constant 0 : i32
    %c0_i32_0 = arith.constant 0 : i32
    %c0_i32_1 = arith.constant 0 : i32
    return %arg1, %c0_i32, %c0_i32_0 : i32, i32, i32
  }
  func.func @transform_6(%arg0: i32, %arg1: i32) -> (i32, i32, i32) {
    %c0_i32 = arith.constant 0 : i32
    %c0_i32_0 = arith.constant 0 : i32
    %c0_i32_1 = arith.constant 0 : i32
    return %arg1, %c0_i32, %c0_i32_0 : i32, i32, i32
  }
  func.func @transform_7(%arg0: i32, %arg1: i32) -> (i32, i32) {
    %c0_i32 = arith.constant 0 : i32
    %c0_i32_0 = arith.constant 0 : i32
    %c0_i32_1 = arith.constant 0 : i32
    return %c0_i32, %c0_i32_0 : i32, i32
  }
  func.func @transform_8(%arg0: i32, %arg1: i32) -> (i32, i32, i32) {
    %c0_i32 = arith.constant 0 : i32
    %c0_i32_0 = arith.constant 0 : i32
    %c0_i32_1 = arith.constant 0 : i32
    return %arg0, %c0_i32, %c0_i32_0 : i32, i32, i32
  }
}

module attributes {stable_mosaic.version = 11 : i64} {
  func.func @_conv3x3_kernel(%arg0: i32, %arg1: memref<1x8x384xbf16, #tpu.memory_space<vmem>>, %arg2: memref<3x72xbf16, #tpu.memory_space<vmem>>, %arg3: memref<3x1xf32, #tpu.memory_space<vmem>>, %arg4: memref<1x384xf32, #tpu.memory_space<vmem>>, %arg5: memref<1x3x384xbf16, #tpu.memory_space<vmem>>) attributes {dimension_semantics = [#tpu.dimension_semantics<parallel>], iteration_bounds = array<i64: 2>, scalar_prefetch = 0 : i64, scratch_operands = 0 : i64, tpu.core_type = #tpu.core_type<tc>, window_params = [{transform_indices = @transform_0, window_bounds = array<i64: 1, 8, 384>}, {pipeline_mode = #tpu.pipeline_mode<synchronous>, transform_indices = @transform_1, window_bounds = array<i64: 3, 72>}, {pipeline_mode = #tpu.pipeline_mode<synchronous>, transform_indices = @transform_2, window_bounds = array<i64: 3, 1>}, {pipeline_mode = #tpu.pipeline_mode<synchronous>, transform_indices = @transform_3, window_bounds = array<i64: 1, 384>}, {transform_indices = @transform_4, window_bounds = array<i64: 1, 3, 384>}]} {
    %c0 = arith.constant 0 : index
    %c0_0 = arith.constant 0 : index
    %c0_1 = arith.constant 0 : index
    %0 = vector.load %arg1[%c0, %c0_0, %c0_1] : memref<1x8x384xbf16, #tpu.memory_space<vmem>>, vector<1x8x384xbf16>
    %1 = vector.shape_cast %0 : vector<1x8x384xbf16> to vector<8x384xbf16>
    %2 = arith.extf %1 : vector<8x384xbf16> to vector<8x384xf32>
    %c0_2 = arith.constant 0 : index
    %c0_3 = arith.constant 0 : index
    %3 = vector.load %arg2[%c0_2, %c0_3] : memref<3x72xbf16, #tpu.memory_space<vmem>>, vector<3x72xbf16>
    %c0_4 = arith.constant 0 : index
    %c0_5 = arith.constant 0 : index
    %4 = vector.load %arg3[%c0_4, %c0_5] : memref<3x1xf32, #tpu.memory_space<vmem>>, vector<3x1xf32>
    %c0_6 = arith.constant 0 : index
    %c0_7 = arith.constant 0 : index
    %5 = vector.load %arg4[%c0_6, %c0_7] : memref<1x384xf32, #tpu.memory_space<vmem>>, vector<1x384xf32>
    %c18_i32 = arith.constant 18 : i32
    %6 = tpu.dynamic_rotate %2 by %c18_i32 dim 1 : vector<8x384xf32>, i32 -> vector<8x384xf32>
    %c366_i32 = arith.constant 366 : i32
    %7 = tpu.dynamic_rotate %2 by %c366_i32 dim 1 : vector<8x384xf32>, i32 -> vector<8x384xf32>
    %c1_i32 = arith.constant 1 : i32
    %8 = tpu.dynamic_rotate %6 by %c1_i32 dim 1 : vector<8x384xf32>, i32 -> vector<8x384xf32>
    %c383_i32 = arith.constant 383 : i32
    %9 = tpu.dynamic_rotate %6 by %c383_i32 dim 1 : vector<8x384xf32>, i32 -> vector<8x384xf32>
    %c1_i32_8 = arith.constant 1 : i32
    %10 = tpu.dynamic_rotate %2 by %c1_i32_8 dim 1 : vector<8x384xf32>, i32 -> vector<8x384xf32>
    %c383_i32_9 = arith.constant 383 : i32
    %11 = tpu.dynamic_rotate %2 by %c383_i32_9 dim 1 : vector<8x384xf32>, i32 -> vector<8x384xf32>
    %c1_i32_10 = arith.constant 1 : i32
    %12 = tpu.dynamic_rotate %7 by %c1_i32_10 dim 1 : vector<8x384xf32>, i32 -> vector<8x384xf32>
    %c383_i32_11 = arith.constant 383 : i32
    %13 = tpu.dynamic_rotate %7 by %c383_i32_11 dim 1 : vector<8x384xf32>, i32 -> vector<8x384xf32>
    %14 = tpu.concatenate %8, %6, %9, %10, %2, %11, %12, %7, %13 in 0 : vector<8x384xf32>, vector<8x384xf32>, vector<8x384xf32>, vector<8x384xf32>, vector<8x384xf32>, vector<8x384xf32>, vector<8x384xf32>, vector<8x384xf32>, vector<8x384xf32> -> vector<72x384xf32>
    %15 = arith.truncf %14 : vector<72x384xf32> to vector<72x384xbf16>
    %cst = arith.constant dense<0.000000e+00> : vector<3x384xf32>
    %16 = tpu.matmul %3, %15, %cst {dimension_numbers = #tpu.dot_dimension_numbers<[1], [0], [0], [1], [0, 0, 1, 1], [], []>} : vector<3x72xbf16>, vector<72x384xbf16>, vector<3x384xf32> -> vector<3x384xf32>
    %17 = vector.broadcast %4 : vector<3x1xf32> to vector<3x384xf32>
    %18 = arith.addf %16, %17 : vector<3x384xf32>
    %19 = vector.broadcast %5 : vector<1x384xf32> to vector<3x384xf32>
    %20 = arith.mulf %18, %19 : vector<3x384xf32>
    %21 = arith.truncf %20 : vector<3x384xf32> to vector<3x384xbf16>
    %c0_12 = arith.constant 0 : index
    %c0_13 = arith.constant 0 : index
    %c0_14 = arith.constant 0 : index
    %22 = vector.load %arg5[%c0_12, %c0_13, %c0_14] : memref<1x3x384xbf16, #tpu.memory_space<vmem>>, vector<1x3x384xbf16>
    %23 = vector.shape_cast %22 : vector<1x3x384xbf16> to vector<3x384xbf16>
    %24 = vector.shape_cast %21 : vector<3x384xbf16> to vector<1x3x384xbf16>
    tpu.vector_store %arg5[%c0_12, %c0_13, %c0_14], %24 {strides = array<i32>} : memref<1x3x384xbf16, #tpu.memory_space<vmem>>, vector<1x3x384xbf16>,
    return
  }
  func.func @transform_0(%arg0: i32) -> (i32, i32, i32) {
    %c0_i32 = arith.constant 0 : i32
    %c0_i32_0 = arith.constant 0 : i32
    %c0_i32_1 = arith.constant 0 : i32
    return %arg0, %c0_i32, %c0_i32_0 : i32, i32, i32
  }
  func.func @transform_1(%arg0: i32) -> (i32, i32) {
    %c0_i32 = arith.constant 0 : i32
    %c0_i32_0 = arith.constant 0 : i32
    %c0_i32_1 = arith.constant 0 : i32
    return %c0_i32, %c0_i32_0 : i32, i32
  }
  func.func @transform_2(%arg0: i32) -> (i32, i32) {
    %c0_i32 = arith.constant 0 : i32
    %c0_i32_0 = arith.constant 0 : i32
    %c0_i32_1 = arith.constant 0 : i32
    return %c0_i32, %c0_i32_0 : i32, i32
  }
  func.func @transform_3(%arg0: i32) -> (i32, i32) {
    %c0_i32 = arith.constant 0 : i32
    %c0_i32_0 = arith.constant 0 : i32
    %c0_i32_1 = arith.constant 0 : i32
    return %c0_i32, %c0_i32_0 : i32, i32
  }
  func.func @transform_4(%arg0: i32) -> (i32, i32, i32) {
    %c0_i32 = arith.constant 0 : i32
    %c0_i32_0 = arith.constant 0 : i32
    %c0_i32_1 = arith.constant 0 : i32
    return %arg0, %c0_i32, %c0_i32_0 : i32, i32, i32
  }
}

</mosaic_0001>

<bundles_post_ra>
// kernel: wdsr_forward.6
= control target key start
LH: loop header
LB: loop body
LE: loop exit
PB: predicated region body
PF: predicated region fallthrough
CT: control target
= control target key end

     0   :  { %s457_s15 = smov 0   ;;  %s499_s0 = inlined_call_operand.vmem [shape: bf16[2,8,128], index: 0, kind: input, shape index: {}]   ;;  %s500_s1 = inlined_call_operand.vmem [shape: bf16[32,72], index: 1, kind: input, shape index: {}]   ;;  %s501_s2 = inlined_call_operand.vmem [shape: f32[32,1], index: 2, kind: input, shape index: {}]   ;;  %s502_s3 = inlined_call_operand.vmem [shape: f32[1,128], index: 3, kind: input, shape index: {}]   ;;  %s503_s4 = inlined_call_operand.vmem [shape: bf16[2,32,128], index: 4, kind: output, shape index: {}]  }
   0x1 LB: > { %s358_s16 = sadd.s32 4294967295, %s425_s15   ;;  %p362_p0 = scmp.ge.s32.totalorder %s425_s15, 1  ;;  %s425_s15 = sphi %s457_s15, %s14_s15  }
   0x2   : > { %p161_p1 = scmp.lt.s32.totalorder %s425_s15, 3 }
   0x4   : > { %p162_p2 = pnand %p362_p0, %p161_p1 }
   0x5   : > { %p186_p3 = scmp.lt.s32.totalorder (!%p162_p2), %s358_s16, 1  ;;  %s427_s21 = smov (!%p162_p2), 118  }
   0x6   : > { %165 = sbr.rel (%p162_p2) target bundleno = 414 (0x19e), region = 36  ;;  %s428_s22 = smov (!%p162_p2), 10  }
   0x7   : > { %s429_s23 = smov (!%p162_p2), 127   ;;  %s430_s24 = smov (!%p162_p2), 1  }
   0xb   : > { %s505_s16 = smov (!%p186_p3, %s358_s16), 1  ;;  %v202_v5 = vld [vmem:[%s501_s2] sm:$0xff]  ;;  %v204_v6 = vld [vmem:[%s501_s2 + $0x10] sm:$0xff]  ;;  %v431_v7 = vmov 0   ;;  %v203_v8 = vld [vmem:[%s501_s2 + $0x8] sm:$0xff]  ;;  %vm265_vm0 = vcmask 1043456  }
   0xc   : > { %s363_s17 = sshll.u32 %s505_s16, 2  ;;  %415 = vset.pattern.permute.xlu1 %v431_v7  ;;  %417 = vset.pattern.permute.xlu0 %v431_v7  ;;  %v205_v11 = vld [vmem:[%s501_s2 + $0x18] sm:$0xff]  ;;  %v379_v23 = vld [vmem:[%s500_s1] sm:$0xff]  ;;  %v380_v24 = vld [vmem:[%s500_s1 + $0x8] sm:$0xff]  ;;  %vm258_vm1 = vcmask 588800   ;;  %s378_s13 = sshll.u32 %s505_s16, 4 }
   0xd   : > { %s189_s20 = scalar_lea.vmem %s499_s0, %s363_s17  ;;  %416 = vset.pattern.permute.xlu2 %v431_v7  ;;  %v418_v32 = vld [vmem:[%s502_s3] ss:$0 sm:$0xff]  ;;  %s194_s18 = scalar_lea.vmem %s503_s4, %s378_s13 }
   0xe   : > { %v196_v0 = vld [vmem:[%s189_s20] sm:$0xf] }
   0xf   : > { %v197_v1 = vunpack.c.l.bf16 %v196_v0 }
  0x11   : > { %209 = vrot.lane.b32.xlu0 %v197_v1, %s427_s21 }
  0x19   : > { %207 = vrot.lane.b32.xlu0 %v197_v1, %s428_s22 }
  0x83   : > { %v210_v2 = vpop.permute.xlu0 %209 }
  0x84   : > { %221 = vrot.lane.b32.xlu1 %v210_v2, %s429_s23 }
  0x8b   : > { %v208_v3 = vpop.permute.xlu0 %207 }
  0x8c   : > { %219 = vrot.lane.b32.xlu1 %v210_v2, %s430_s24  ;;  %211 = vrot.lane.b32.xlu0 %v208_v3, %s430_s24  ;;  %v410_v4 = vpack.i.bf16 %v208_v3, %v197_v1 }
  0x8e   : > { %411 = vrot.lane.b32.xlu2 %v410_v4, %s429_s23 }
  0x94   : > { %230 = vperm.xlu1 %415, %v202_v5   ;;  %240 = vperm.xlu0 %417, %v204_v6  }
  0x96   : > { %215 = vrot.lane.b32.xlu2 %v197_v1, %s430_s24 }
  0x9c   : > { %245 = vperm.xlu1 %415, %v205_v11  }
  0x9e   : > { %235 = vperm.xlu2 %416, %v203_v8  }
  0xe8   : > { %v412_v13 = vpop.permute.xlu2 %411 }
  0xe9   : > { %v413_v15 = vunpack.i.l.bf16 %v412_v13  ;;  %v414_v17 = vunpack.i.h.bf16 %v412_v13 }
  0xeb   : > { %v225_v18 = vpack.c.bf16 %v413_v15, %v197_v1 }
  0xf0   : > { %v216_v19 = vpop.permute.xlu2 %215 }
  0xf1   : > { %v224_v20 = vpack.c.bf16 %v216_v19, %v414_v17 }
  0xf6   : > { %v222_v9 = vpop.permute.xlu1 %221 }
  0xf7   : > { %v227_v10 = vpack.c.bf16 %v222_v9, %v222_v9 }
  0xf8   : > { %v236_v29 = vpop.permute.xlu2 %235 }
  0xf9   : > { %v267_v12 = vsel %vm265_vm0, %v227_v10, 0 }
  0xfa   : > { %272 = vmatpush.bf16.msra.mxu0 %v267_v12  ;;  %392 = vmatpush.bf16.msra.mxu1 %v267_v12 }
  0xfe   : > { %v220_v14 = vpop.permute.xlu1 %219  ;;  %v212_v21 = vpop.permute.xlu0 %211 }
  0xff   : > { %v226_v16 = vpack.c.bf16 %v210_v2, %v220_v14  ;;  %v223_v22 = vpack.c.bf16 %v208_v3, %v212_v21 }
 0x101   : > { %273 = vmatpush.bf16.msra.mxu0 %v226_v16  ;;  %393 = vmatpush.bf16.msra.mxu1 %v226_v16 }
 0x105   : > { %274 = vmatpush.bf16.msra.mxu0 %v225_v18  ;;  %394 = vmatpush.bf16.msra.mxu1 %v225_v18 }
 0x106   : > { %v231_v25 = vpop.permute.xlu1 %230  ;;  %v241_v28 = vpop.permute.xlu0 %240 }
 0x109   : > { %275 = vmatpush.bf16.msra.mxu0 %v224_v20  ;;  %395 = vmatpush.bf16.msra.mxu1 %v224_v20 }
 0x10d   : > { %276 = vmatpush.bf16.msra.mxu0 %v223_v22  ;;  %396 = vmatpush.bf16.msra.mxu1 %v223_v22 }
 0x10e   : > { %v246_v30 = vpop.permute.xlu1 %245 }
 0x110   : > { %374 = vmatmul.msk.bf16.vlgmr.msra.gmra.mxu0 %vm258_vm1, %v379_v23  ;;  %375 = vmatmul.msk.bf16.vlgmr.msra.gmra.mxu1 %vm258_vm1, %v380_v24 }
 0x18d   : > { %v278_v26 = vpop.f32.mrf.mxu0  ;;  %v283_v27 = vpop.f32.mrf.mxu1 }
 0x18e   : > { %v279_v31 = vadd.f32 %v278_v26, %v231_v25  ;;  %v284_v33 = vadd.f32 %v283_v27, %v241_v28 }
 0x190   : > { %v291_v38 = vmul.f32 %v418_v32, %v279_v31  ;;  %v293_v39 = vmul.f32 %v418_v32, %v284_v33 }
 0x195   : > { %v280_v34 = vpop.f32.mrf.mxu0  ;;  %v285_v35 = vpop.f32.mrf.mxu1 }
 0x196   : > { %v281_v36 = vadd.f32 %v280_v34, %v236_v29  ;;  %v286_v37 = vadd.f32 %v285_v35, %v246_v30 }
 0x198   : > { %v292_v40 = vmul.f32 %v418_v32, %v281_v36  ;;  %v294_v41 = vmul.f32 %v418_v32, %v286_v37 }
 0x19a   : > { %v384_v42 = vpack.c.bf16 %v292_v40, %v291_v38  ;;  %v389_v43 = vpack.c.bf16 %v294_v41, %v293_v39 }
 0x19c   : > { %385 = vst [vmem:[%s194_s18] sm:$0xff] %v384_v42  }
 0x19d   : > { %391 = vst [vmem:[%s194_s18 + $0x8] sm:$0xff] %v389_v43  }
 0x19e PF: > { %s14_s15 = sadd.s32 1, %s425_s15  }
 0x19f   : > { %p11_p4 = scmp.ge.s32.totalorder %s14_s15, 4  }
 0x1a1   :  { %13 = sbr.rel (!%p11_p4) target bundleno = 1 (0x1), region = 66 }

// kernel: wdsr_forward.5
= control target key start
LH: loop header
LB: loop body
LE: loop exit
PB: predicated region body
PF: predicated region fallthrough
CT: control target
= control target key end

     0   :  { %s942_s27 = smov 0   ;;  %s944_s28 = smov 0   ;;  %s1055_s0 = inlined_call_operand.vmem [shape: bf16[2,8,128], index: 0, kind: input, shape index: {}]   ;;  %s1056_s1 = inlined_call_operand.vmem [shape: bf16[2,48,8], index: 1, kind: input, shape index: {}]   ;;  %s1057_s2 = inlined_call_operand.vmem [shape: f32[2,48,1], index: 2, kind: input, shape index: {}]   ;;  %s1058_s3 = inlined_call_operand.vmem [shape: bf16[2,8,48], index: 3, kind: input, shape index: {}]   ;;  %s1059_s4 = inlined_call_operand.vmem [shape: f32[2,8,1], index: 4, kind: input, shape index: {}]   ;;  %s1060_s5 = inlined_call_operand.vmem [shape: bf16[2,8,72], index: 5, kind: input, shape index: {}]   ;;  %s1061_s6 = inlined_call_operand.vmem [shape: f32[2,8,1], index: 6, kind: input, shape index: {}]   ;;  %s1062_s7 = inlined_call_operand.vmem [shape: f32[1,128], index: 7, kind: input, shape index: {}]   ;;  %s1063_s8 = inlined_call_operand.vmem [shape: bf16[2,8,128], index: 8, kind: output, shape index: {}]  }
   0x1   :  { %1065 = sst [smem:[#allocation6_spill]] %s1055_s0  ;;  %s946_s29 = smov 0  }
   0x2   :  { %1066 = sst [smem:[#allocation7_spill]] %s1056_s1  ;;  %s948_s30 = smov 0  }
   0x3   :  { %s950_s9 = smov 0  }
   0x4 LB: > { %1067 = sst [smem:[#allocation3_spill]] %s886_s30  ;;  %s27_s10 = sadd.s32 1, %s882_s29  ;;  %s890_s9 = sphi %s950_s9, %s18_s9   ;;  %s886_s30 = sphi %s948_s30, %s1074_s30   ;;  %s882_s29 = sphi %s946_s29, %s1076_s29   ;;  %s878_s28 = sphi %s944_s28, %s1072_s28   ;;  %s874_s27 = sphi %s942_s27, %s1075_s27  }
   0x5   : > { %s30_s11 = sadd.s32 1, %s886_s30  ;;  %p28_p0 = scmp.ge.s32.totalorder %s27_s10, 2 }
   0x6   : > { %p762_p1 = scmp.ge.s32.totalorder %s890_s9, 1  ;;  %p329_p2 = scmp.lt.s32.totalorder %s890_s9, 5 }
   0x7   : > { %s1078_s10 = smov (%p28_p0, %s27_s10), 0  ;;  %s1080_s11 = smov (!%p28_p0, %s30_s11), %s886_s30 }
   0x8   : > { %1068 = sst [smem:[#allocation4_spill]] %s1078_s10  ;;  %p330_p3 = pnand %p762_p1, %p329_p2 }
   0x9   : > { %p32_p4 = scmp.ge.s32.totalorder %s1080_s11, 2  ;;  %p387_p5 = scmp.lt.s32.totalorder (!%p330_p3), %s878_s28, 1 }
   0xa   : > { %333 = sbr.rel (%p330_p3) target bundleno = 750 (0x2ee), region = 52  ;;  %p391_p6 = scmp.lt.s32.totalorder (!%p330_p3), %s874_s27, 1 }
   0xb   : > { %s1082_s11 = smov (%p32_p4, %s1080_s11), 0  ;;  %s1070_s0 = sld [smem:[#allocation6_spill]] (!%p330_p3) }
   0xc   : > { %1069 = sst [smem:[#allocation5_spill]] %s1082_s11  ;;  %p771_p7 = scmp.ne.s32.totalorder (!%p330_p3), %s874_s27, 0 }
   0xd   : > { %s1071_s1 = sld [smem:[#allocation7_spill]] (!%p330_p3) }
   0xf   : > { %s1084_s28 = smov (!%p387_p5, %s878_s28), 1 }
  0x10   : > { %s392_s12 = scalar_select %p391_p6, %s874_s27, 1 }
  0x11   : > { %s763_s13 = sshll.u32 %s1084_s28, 2 }
  0x12   : > { %s390_s16 = scalar_lea.vmem %s1070_s0, %s763_s13  ;;  %s796_s17 = smul.u32 24, %s392_s12 }
  0x13   : > { %s797_s18 = smul.u32 48, %s392_s12  ;;  %s766_s19 = sshll.u32 %s392_s12, 2 }
  0x14   : > { %s982_s22 = scalar_lea.vmem %s1071_s1, %s796_s17  ;;  %s987_s25 = scalar_lea.vmem %s1058_s3, %s766_s19 }
  0x15   : > { %s992_s28 = scalar_lea.vmem %s1057_s2, %s797_s18  ;;  %s767_s14 = sshll.u32 %s392_s12, 3 }
  0x16   : > { %s997_s10 = scalar_lea.vmem %s1059_s4, %s767_s14  ;;  %s1002_s17 = scalar_lea.vmem %s1060_s5, %s766_s19 }
  0x17   : > { %s1007_s24 = scalar_lea.vmem %s1061_s6, %s767_s14  ;;  %s1012_s18 = scalar_lea.vmem %s1063_s8, %s763_s13 }
  0x18   : > { %425 = sbr.rel (%p771_p7) target bundleno = 33 (0x21), region = 56 }
  0x1d   : > { %v426_v0 = vld [vmem:[%s390_s16] sm:$0xf] }
  0x1e   : > { %v427_v1 = vunpack.c.l.bf16 %v426_v0 }
  0x20   : > { %428 = vst [vmem:[#allocation2] sm:$0xff] %v427_v1 }
  0x21 PF: > { %vm499_vm0 = vcmask 1043456   ;;  %v892_v4 = vmov 0   ;;  %v442_v5 = vld [vmem:[%s992_s28 + $0x20] sm:$0xff]  ;;  %v440_v6 = vld [vmem:[%s992_s28 + $0x10] sm:$0xff]  ;;  %v793_v7 = vld [vmem:[%s982_s22 + $0x8] sm:$0xff]  ;;  %vm489_vm1 = vcmask 64512  }
  0x22   : > { %844 = vset.pattern.permute.xlu1 %v892_v4  ;;  %843 = vset.pattern.permute.xlu0 %v892_v4  ;;  %v792_v9 = vld [vmem:[%s982_s22] sm:$0xff]  ;;  %v443_v11 = vld [vmem:[%s992_s28 + $0x28] sm:$0xff]  ;;  %v441_v12 = vld [vmem:[%s992_s28 + $0x18] sm:$0xff]  ;;  %vm543_vm2 = vcmask 392192   ;;  %s893_s30 = smov 10   ;;  %s895_s12 = smov 127  }
  0x23   : > { %466 = vperm.xlu0 %843, %v442_v5   ;;  %456 = vperm.xlu1 %844, %v440_v6   ;;  %v438_v10 = vld [vmem:[%s992_s28] sm:$0xff]  ;;  %v439_v13 = vld [vmem:[%s992_s28 + $0x8] sm:$0xff]  ;;  %v794_v15 = vld [vmem:[%s982_s22 + $0x10] sm:$0xff]  ;;  %s896_s13 = smov 1   ;;  %vm592_vm3 = vcmask 588800   ;;  %p789_p8 = scmp.ne.s32.totalorder %s874_s27, 1 }
  0x24   : > { %845 = vset.pattern.permute.xlu2 %v892_v4  ;;  %v537_v14 = vld [vmem:[%s997_s10] sm:$0xff]  ;;  %s894_s10 = smov 118  }
  0x25   : > { %446 = vperm.xlu2 %845, %v438_v10   ;;  %v533_v43 = vld [vmem:[%s987_s25] sm:$0xf] }
  0x26   : > { %v851_v44 = vld [vmem:[%s1062_s7] ss:$0 sm:$0xff] }
  0x27   : > { %v1015_v2 = vld [vmem:[#allocation2] sm:$0xff] }
  0x28   : > { %v437_v3 = vpack.c.bf16 %v1015_v2, %v1015_v2  ;;  %v565_v52 = vld [vmem:[%s1007_s24] sm:$0xff] }
  0x29   : > { %v564_v4 = vld [vmem:[%s1002_s17] sm:$0xf] }
  0x2a   : > { %v501_v8 = vsel %vm499_vm0, %v437_v3, 0 }
  0x2b   : > { %795 = vmatpush.bf16.msra.mxu3 %v501_v8  ;;  %510 = vmatpush.bf16.msra.mxu0 %v501_v8 }
  0x2c   : > { %471 = vperm.xlu0 %843, %v443_v11   ;;  %461 = vperm.xlu1 %844, %v441_v12  }
  0x2d   : > { %451 = vperm.xlu2 %845, %v439_v13  }
  0x2e   : > { %785 = vmatmul.msk.bf16.vlgmr.msra.gmra.mxu3 %vm489_vm1, %v793_v7  ;;  %784 = vmatmul.msk.bf16.vlgmr.msra.gmra.mxu0 %vm489_vm1, %v792_v9 }
  0x34   : > { %540 = vperm.xlu0 %843, %v537_v14  }
  0x3e   : > { %786 = vmatmul.msk.bf16.gmra.mxu3 %vm489_vm1, %v794_v15 }
  0x7f   : > { %v447_v20 = vpop.permute.xlu2 %446 }
  0x87   : > { %v452_v29 = vpop.permute.xlu2 %451 }
  0x95   : > { %v457_v18 = vpop.permute.xlu1 %456  ;;  %v467_v19 = vpop.permute.xlu0 %466 }
  0x9e   : > { %v462_v23 = vpop.permute.xlu1 %461  ;;  %v472_v25 = vpop.permute.xlu0 %471 }
  0xa6   : > { %v541_v45 = vpop.permute.xlu0 %540 }
  0xab   : > { %v512_v21 = vpop.f32.mrf.mxu0 }
  0xac   : > { %v513_v35 = vadd.f32 %v512_v21, %v447_v20 }
  0xae   : > { %v527_v39 = vmax.f32 %v513_v35, 0.0 }
  0xb1   : > { %v517_v16 = vpop.f32.mrf.mxu3 }
  0xb2   : > { %v518_v31 = vadd.f32 %v517_v16, %v457_v18 }
  0xb3   : > { %v514_v30 = vpop.f32.mrf.mxu0 }
  0xb4   : > { %v515_v36 = vadd.f32 %v514_v30, %v452_v29  ;;  %v529_v38 = vmax.f32 %v518_v31, 0.0 }
  0xb6   : > { %v528_v40 = vmax.f32 %v515_v36, 0.0 }
  0xb8   : > { %v534_v42 = vpack.c.bf16 %v528_v40, %v527_v39 }
  0xb9   : > { %v519_v17 = vpop.f32.mrf.mxu3 }
  0xba   : > { %v520_v27 = vadd.f32 %v519_v17, %v462_v23 }
  0xbc   : > { %v530_v34 = vmax.f32 %v520_v27, 0.0 }
  0xbe   : > { %v535_v41 = vpack.c.bf16 %v530_v34, %v529_v38 }
  0xc1   : > { %v522_v22 = vpop.f32.mrf.mxu3 }
  0xc2   : > { %v523_v24 = vadd.f32 %v522_v22, %v467_v19 }
  0xc4   : > { %v531_v32 = vmax.f32 %v523_v24, 0.0 }
  0xc9   : > { %v524_v26 = vpop.f32.mrf.mxu3 }
  0xca   : > { %v525_v28 = vadd.f32 %v524_v26, %v472_v25 }
  0xcc   : > { %v532_v33 = vmax.f32 %v525_v28, 0.0 }
  0xce   : > { %v536_v37 = vpack.c.bf16 %v532_v33, %v531_v32 }
  0xd0   : > { %552 = vmatpush.bf16.msra.mxu1 %v536_v37 }
  0xd4   : > { %553 = vmatpush.bf16.msra.mxu1 %v535_v41 }
  0xd8   : > { %554 = vmatpush.bf16.msra.mxu1 %v534_v42 }
  0xdb   : > { %787 = vmatmul.msk.bf16.vlgmr.msra.gmra.mxu1 %vm543_vm2, %v533_v43 }
 0x158   : > { %v556_v46 = vpop.f32.mrf.mxu1 }
 0x159   : > { %v557_v47 = vadd.f32 %v556_v46, %v541_v45 }
 0x15b   : > { %v563_v48 = vmul.f32 %v851_v44, %v557_v47 }
 0x15d   : > { %566 = vrot.lane.b32.xlu2 %v563_v48, %s893_s30  ;;  %568 = vrot.lane.b32.xlu1 %v563_v48, %s894_s10 }
 0x160   : > { %v558_v49 = vpop.f32.mrf.mxu1 }
 0x1b7   : > { %v567_v50 = vpop.permute.xlu2 %566 }
 0x1b8   : > { %v846_v51 = vpack.i.bf16 %v567_v50, %v563_v48 }
 0x1ba   : > { %847 = vrot.lane.b32.xlu2 %v846_v51, %s895_s12 }
 0x1c2   : > { %589 = vperm.xlu2 %845, %v565_v52  }
 0x1cf   : > { %v569_v53 = vpop.permute.xlu1 %568 }
 0x1d0   : > { %578 = vrot.lane.b32.xlu1 %v569_v53, %s896_s13  ;;  %580 = vrot.lane.b32.xlu0 %v569_v53, %s895_s12 }
 0x1d8   : > { %570 = vrot.lane.b32.xlu1 %v567_v50, %s896_s13  ;;  %574 = vrot.lane.b32.xlu0 %v563_v48, %s896_s13 }
 0x214   : > { %v848_v56 = vpop.permute.xlu2 %847 }
 0x215   : > { %v849_v59 = vunpack.i.l.bf16 %v848_v56  ;;  %v850_v63 = vunpack.i.h.bf16 %v848_v56 }
 0x217   : > { %v584_v61 = vpack.c.bf16 %v849_v59, %v563_v48 }
 0x21c   : > { %v590_v5 = vpop.permute.xlu2 %589 }
 0x242   : > { %v581_v54 = vpop.permute.xlu0 %580  ;;  %v579_v57 = vpop.permute.xlu1 %578 }
 0x243   : > { %v586_v55 = vpack.c.bf16 %v581_v54, %v581_v54  ;;  %v585_v60 = vpack.c.bf16 %v569_v53, %v579_v57 }
 0x245   : > { %v597_v58 = vsel %vm499_vm0, %v586_v55, 0 }
 0x246   : > { %602 = vmatpush.bf16.msra.mxu2 %v597_v58 }
 0x24a   : > { %603 = vmatpush.bf16.msra.mxu2 %v585_v60  ;;  %v575_v62 = vpop.permute.xlu0 %574  ;;  %v571_v1 = vpop.permute.xlu1 %570 }
 0x24b   : > { %v583_v0 = vpack.c.bf16 %v575_v62, %v850_v63  ;;  %v582_v3 = vpack.c.bf16 %v567_v50, %v571_v1 }
 0x24e   : > { %604 = vmatpush.bf16.msra.mxu2 %v584_v61 }
 0x252   : > { %605 = vmatpush.bf16.msra.mxu2 %v583_v0 }
 0x256   : > { %606 = vmatpush.bf16.msra.mxu2 %v582_v3 }
 0x259   : > { %788 = vmatmul.msk.bf16.vlgmr.msra.gmra.mxu2 %vm592_vm3, %v564_v4 }
 0x2dc   : > { %v608_v6 = vpop.f32.mrf.mxu2 }
 0x2dd   : > { %v609_v7 = vadd.f32 %v608_v6, %v590_v5 }
 0x2df   : > { %v612_v8 = vmul.f32 %v851_v44, %v609_v7 }
 0x2e0   : > { %618 = sbr.rel (%p789_p8) target bundleno = 750 (0x2ee), region = 60 }
 0x2e1   : > { %v613_v9 = vadd.f32 %v612_v8, %v1015_v2 }
 0x2e3   : > { %614 = vst [vmem:[#allocation2] sm:$0xff] %v613_v9 }
 0x2e4   : > { %v610_v10 = vpop.f32.mrf.mxu2 }
 0x2ea   : > { %v619_v11 = vld [vmem:[#allocation2] sm:$0xff] }
 0x2eb   : > { %v620_v12 = vpack.c.bf16 %v619_v11, %v619_v11 }
 0x2ed   : > { %621 = vst [vmem:[%s1012_s18] sm:$0xf] %v620_v12 }
 0x2ee PF: > { %s18_s9 = sadd.s32 1, %s890_s9   ;;  %s1072_s28 = sld [smem:[#allocation3_spill]] }
 0x2ef   : > { %p15_p9 = scmp.ge.s32.totalorder %s18_s9, 6   ;;  %s1073_s16 = sld [smem:[#allocation4_spill]] }
 0x2f0   : > { %s1074_s30 = sld [smem:[#allocation5_spill]]  ;;  %s1075_s27 = smov %s882_s29 }
 0x2f1   :  { %17 = sbr.rel (!%p15_p9) target bundleno = 4 (0x4), region = 108 }
 0x2f5   : > { %s1076_s29 = smov %s1073_s16 }

// kernel: wdsr_forward.4
= control target key start
LH: loop header
LB: loop body
LE: loop exit
PB: predicated region body
PF: predicated region fallthrough
CT: control target
= control target key end

     0   :  { %s374_s15 = smov 0   ;;  %s407_s0 = inlined_call_operand.vmem [shape: bf16[2,8,128], index: 0, kind: input, shape index: {}]   ;;  %s408_s1 = inlined_call_operand.vmem [shape: bf16[8,72], index: 1, kind: input, shape index: {}]   ;;  %s409_s2 = inlined_call_operand.vmem [shape: f32[8,1], index: 2, kind: input, shape index: {}]   ;;  %s410_s3 = inlined_call_operand.vmem [shape: f32[1,128], index: 3, kind: input, shape index: {}]   ;;  %s411_s4 = inlined_call_operand.vmem [shape: bf16[2,8,128], index: 4, kind: output, shape index: {}]  }
   0x1 LB: > { %s305_s16 = sadd.s32 4294967295, %s342_s15   ;;  %p309_p0 = scmp.ge.s32.totalorder %s342_s15, 1  ;;  %s342_s15 = sphi %s374_s15, %s14_s15  }
   0x2   : > { %p161_p1 = scmp.lt.s32.totalorder %s342_s15, 3 }
   0x4   : > { %p162_p2 = pnand %p309_p0, %p161_p1 }
   0x5   : > { %p185_p3 = scmp.lt.s32.totalorder (!%p162_p2), %s305_s16, 1  ;;  %s344_s21 = smov (!%p162_p2), 118  }
   0x6   : > { %165 = sbr.rel (%p162_p2) target bundleno = 406 (0x196), region = 36  ;;  %s345_s22 = smov (!%p162_p2), 10  }
   0x7   : > { %s346_s23 = smov (!%p162_p2), 127   ;;  %s347_s24 = smov (!%p162_p2), 1  }
   0xb   : > { %s413_s16 = smov (!%p185_p3, %s305_s16), 1  ;;  %v197_v5 = vld [vmem:[%s409_s2] sm:$0xff]  ;;  %v348_v6 = vmov 0   ;;  %vm229_vm0 = vcmask 1043456   ;;  %vm225_vm1 = vcmask 588800  }
   0xc   : > { %s310_s17 = sshll.u32 %s413_s16, 2  ;;  %333 = vset.pattern.permute.xlu1 %v348_v6  ;;  %334 = vset.pattern.permute.xlu0 %v348_v6  ;;  %v196_v20 = vld [vmem:[%s408_s1] sm:$0xf] }
   0xd   : > { %s188_s20 = scalar_lea.vmem %s407_s0, %s310_s17  ;;  %v335_v22 = vld [vmem:[%s410_s3] ss:$0 sm:$0xff]  ;;  %s192_s7 = scalar_lea.vmem %s411_s4, %s310_s17 }
   0xe   : > { %v194_v0 = vld [vmem:[%s188_s20] sm:$0xf] }
   0xf   : > { %v195_v1 = vunpack.c.l.bf16 %v194_v0 }
  0x11   : > { %201 = vrot.lane.b32.xlu0 %v195_v1, %s344_s21 }
  0x19   : > { %199 = vrot.lane.b32.xlu0 %v195_v1, %s345_s22 }
  0x83   : > { %v202_v2 = vpop.permute.xlu0 %201 }
  0x84   : > { %213 = vrot.lane.b32.xlu1 %v202_v2, %s346_s23 }
  0x8b   : > { %v200_v3 = vpop.permute.xlu0 %199 }
  0x8c   : > { %211 = vrot.lane.b32.xlu1 %v202_v2, %s347_s24  ;;  %203 = vrot.lane.b32.xlu0 %v200_v3, %s347_s24  ;;  %v328_v4 = vpack.i.bf16 %v200_v3, %v195_v1 }
  0x8e   : > { %329 = vrot.lane.b32.xlu2 %v328_v4, %s346_s23 }
  0x94   : > { %222 = vperm.xlu1 %333, %v197_v5  }
  0x96   : > { %207 = vrot.lane.b32.xlu2 %v195_v1, %s347_s24 }
  0xe8   : > { %v330_v10 = vpop.permute.xlu2 %329 }
  0xe9   : > { %v331_v12 = vunpack.i.l.bf16 %v330_v10  ;;  %v332_v14 = vunpack.i.h.bf16 %v330_v10 }
  0xeb   : > { %v217_v15 = vpack.c.bf16 %v331_v12, %v195_v1 }
  0xf0   : > { %v208_v16 = vpop.permute.xlu2 %207 }
  0xf1   : > { %v216_v17 = vpack.c.bf16 %v208_v16, %v332_v14 }
  0xf6   : > { %v214_v7 = vpop.permute.xlu1 %213 }
  0xf7   : > { %v219_v8 = vpack.c.bf16 %v214_v7, %v214_v7 }
  0xf9   : > { %v231_v9 = vsel %vm229_vm0, %v219_v8, 0 }
  0xfa   : > { %236 = vmatpush.bf16.msra.mxu0 %v231_v9 }
  0xfe   : > { %v212_v11 = vpop.permute.xlu1 %211  ;;  %v204_v18 = vpop.permute.xlu0 %203 }
  0xff   : > { %v218_v13 = vpack.c.bf16 %v202_v2, %v212_v11  ;;  %v215_v19 = vpack.c.bf16 %v200_v3, %v204_v18 }
 0x101   : > { %237 = vmatpush.bf16.msra.mxu0 %v218_v13 }
 0x105   : > { %238 = vmatpush.bf16.msra.mxu0 %v217_v15 }
 0x106   : > { %v223_v21 = vpop.permute.xlu1 %222 }
 0x109   : > { %239 = vmatpush.bf16.msra.mxu0 %v216_v17 }
 0x10d   : > { %240 = vmatpush.bf16.msra.mxu0 %v215_v19 }
 0x110   : > { %312 = vmatmul.msk.bf16.vlgmr.msra.gmra.mxu0 %vm225_vm1, %v196_v20 }
 0x18d   : > { %v242_v23 = vpop.f32.mrf.mxu0 }
 0x18e   : > { %v243_v24 = vadd.f32 %v242_v23, %v223_v21 }
 0x190   : > { %v249_v25 = vmul.f32 %v335_v22, %v243_v24 }
 0x192   : > { %v250_v26 = vpack.c.bf16 %v249_v25, %v249_v25 }
 0x194   : > { %251 = vst [vmem:[%s192_s7] sm:$0xf] %v250_v26 }
 0x195   : > { %v244_v27 = vpop.f32.mrf.mxu0 }
 0x196 PF: > { %s14_s15 = sadd.s32 1, %s342_s15  }
 0x197   : > { %p11_p4 = scmp.ge.s32.totalorder %s14_s15, 4  }
 0x199   :  { %13 = sbr.rel (!%p11_p4) target bundleno = 1 (0x1), region = 66 }

// kernel: wdsr_forward.7
= control target key start
LH: loop header
LB: loop body
LE: loop exit
PB: predicated region body
PF: predicated region fallthrough
CT: control target
= control target key end

     0   :  { %s571_s15 = smov 0   ;;  %s713_s0 = inlined_call_operand.vmem [shape: bf16[2,8,384], index: 0, kind: input, shape index: {}]   ;;  %s714_s1 = inlined_call_operand.vmem [shape: bf16[3,72], index: 1, kind: input, shape index: {}]   ;;  %s715_s2 = inlined_call_operand.vmem [shape: f32[3,1], index: 2, kind: input, shape index: {}]   ;;  %s716_s3 = inlined_call_operand.vmem [shape: f32[1,384], index: 3, kind: input, shape index: {}]   ;;  %s717_s4 = inlined_call_operand.vmem [shape: bf16[2,3,384], index: 4, kind: output, shape index: {}]  }
   0x1 LB: > { %s454_s16 = sadd.s32 4294967295, %s539_s15   ;;  %p458_p0 = scmp.ge.s32.totalorder %s539_s15, 1  ;;  %s539_s15 = sphi %s571_s15, %s14_s15  }
   0x2   : > { %p162_p1 = scmp.lt.s32.totalorder %s539_s15, 3 }
   0x4   : > { %p163_p2 = pnand %p458_p0, %p162_p1 }
   0x5   : > { %p188_p3 = scmp.lt.s32.totalorder (!%p163_p2), %s454_s16, 1  ;;  %s541_s21 = smov (!%p163_p2), 18  }
   0x6   : > { %166 = sbr.rel (%p163_p2) target bundleno = 426 (0x1aa), region = 36  ;;  %s542_s22 = smov (!%p163_p2), 110  }
   0x7   : > { %s543_s23 = smov (!%p163_p2), 127   ;;  %s544_s24 = smov (!%p163_p2), 1  }
   0xb   : > { %s723_s16 = smov (!%p188_p3, %s454_s16), 1  ;;  %v213_v6 = vlaneseq  ;;  %vm309_vm3 = vcmask 1043456   ;;  %v205_v41 = vld [vmem:[%s715_s2] sm:$0x7]  ;;  %v545_v42 = vmov 0   ;;  %vm305_vm5 = vcmask 588800  }
   0xc   : > { %s466_s17 = smul.u32 12, %s723_s16  ;;  %531 = vset.pattern.permute.xlu2 %v545_v42  ;;  %532 = vset.pattern.permute.xlu0 %v545_v42  ;;  %vm375_vm6 = vcmask 1041408   ;;  %vm386_vm7 = vsmask.f32 1280  ;;  %vm388_vm8 = vcmask 1043458   ;;  %vm379_vm12 = vcmask 1045508  }
   0xd   : > { %v595_v9 = vand.u32 127, %v213_v6  ;;  %vm389_vm9 = vsmask.f32 3328  ;;  %vm690_vm10 = vmand %vm375_vm6, %vm386_vm7  ;;  %s467_s5 = smul.u32 6, %s723_s16  ;;  %vm393_vm13 = vsmask.f32 5376 }
   0xe   : > { %s192_s20 = scalar_lea.vmem %s713_s0, %s466_s17  ;;  %vm694_vm11 = vmand %vm388_vm8, %vm389_vm9 }
   0xf   : > { %v199_v0 = vld [vmem:[%s192_s20] sm:$0xff]  ;;  %v200_v4 = vld [vmem:[%s192_s20 + $0x8] sm:$0xf]  ;;  %vm225_vm0 = vcmp.lt.s32.totalorder %v595_v9, 110  ;;  %vm215_vm1 = vcmp.lt.s32.totalorder %v595_v9, 18  ;;  %vm245_vm2 = vcmp.lt.s32.totalorder %v595_v9, 127  ;;  %vm391_vm14 = vmor %vm694_vm11, %vm690_vm10  ;;  %s197_s8 = scalar_lea.vmem %s717_s4, %s467_s5 }
  0x10   : > { %v585_v1 = vunpack.c.l.bf16 %v199_v0  ;;  %v587_v2 = vunpack.c.h.bf16 %v199_v0  ;;  %v591_v5 = vunpack.c.l.bf16 %v200_v4  ;;  %vm235_vm4 = vcmp.lt.s32.totalorder %v595_v9, 1  ;;  %vm394_vm15 = vmand %vm379_vm12, %vm393_vm13 }
  0x12   : > { %v486_v3 = vpack.i.bf16 %v587_v2, %v585_v1 }
  0x14   : > { %487 = vrot.lane.b32.xlu1 %v486_v3, %s541_s21  ;;  %482 = vrot.lane.b32.xlu0 %v486_v3, %s542_s22 }
  0x1c   : > { %211 = vrot.lane.b32.xlu1 %v591_v5, %s541_s21  ;;  %223 = vrot.lane.b32.xlu0 %v591_v5, %s542_s22 }
  0x86   : > { %v488_v7 = vpop.permute.xlu1 %487  ;;  %v483_v8 = vpop.permute.xlu0 %482 }
  0x87   : > { %v485_v10 = vunpack.i.h.bf16 %v483_v8  ;;  %v484_v11 = vunpack.i.l.bf16 %v483_v8  ;;  %v489_v12 = vunpack.i.l.bf16 %v488_v7  ;;  %v490_v22 = vunpack.i.h.bf16 %v488_v7 }
  0x89   : > { %v605_v18 = vsel %vm225_vm0, %v484_v11, %v485_v10  ;;  %v618_v24 = vsel %vm215_vm1, %v489_v12, %v490_v22 }
  0x8a   : > { %v521_v25 = vpack.i.bf16 %v618_v24, %v591_v5  ;;  %v511_v28 = vpack.i.bf16 %v587_v2, %v605_v18 }
  0x8e   : > { %v212_v13 = vpop.permute.xlu1 %211  ;;  %v224_v14 = vpop.permute.xlu0 %223 }
  0x8f   : > { %v601_v15 = vsel %vm215_vm1, %v212_v13, %v489_v12  ;;  %v603_v16 = vsel %vm225_vm0, %v485_v10, %v224_v14  ;;  %v228_v17 = vsel %vm225_vm0, %v224_v14, %v484_v11  ;;  %v614_v23 = vsel %vm215_vm1, %v490_v22, %v212_v13  ;;  %vm395_vm0 = vmor %vm394_vm15, %vm391_vm14 }
  0x90   : > { %v506_v19 = vpack.i.bf16 %v601_v15, %v591_v5  ;;  %v501_v20 = vpack.i.bf16 %v585_v1, %v603_v16  ;;  %v491_v21 = vpack.i.bf16 %v228_v17, %v605_v18  ;;  %v516_v26 = vpack.i.bf16 %v587_v2, %v614_v23 }
  0x91   : > { %v496_v27 = vpack.i.bf16 %v228_v17, %v603_v16  ;;  %v526_v29 = vpack.i.bf16 %v585_v1, %v614_v23 }
  0x92   : > { %507 = vrot.lane.b32.xlu1 %v506_v19, %s543_s23  ;;  %502 = vrot.lane.b32.xlu0 %v501_v20, %s543_s23 }
  0x93   : > { %492 = vrot.lane.b32.xlu2 %v491_v21, %s543_s23 }
  0x9a   : > { %522 = vrot.lane.b32.xlu1 %v521_v25, %s544_s24  ;;  %517 = vrot.lane.b32.xlu0 %v516_v26, %s543_s23 }
  0x9b   : > { %497 = vrot.lane.b32.xlu2 %v496_v27, %s544_s24 }
  0xa2   : > { %229 = vrot.lane.b32.xlu1 %v601_v15, %s544_s24  ;;  %241 = vrot.lane.b32.xlu0 %v618_v24, %s543_s23 }
  0xa3   : > { %512 = vrot.lane.b32.xlu2 %v511_v28, %s544_s24 }
  0xab   : > { %527 = vrot.lane.b32.xlu2 %v526_v29, %s544_s24 }
  0xb3   : > { %302 = vperm.xlu2 %531, %v205_v41  }
  0xed   : > { %v493_v30 = vpop.permute.xlu2 %492 }
  0xee   : > { %v495_v31 = vunpack.i.h.bf16 %v493_v30  ;;  %v494_v32 = vunpack.i.l.bf16 %v493_v30  ;;  %v204_v30 = vld [vmem:[%s714_s1] sm:$0x3] }
  0xf0   : > { %v284_v33 = vsel %vm245_vm2, %v495_v31, %v494_v32 }
  0xf1   : > { %v299_v34 = vpack.c.bf16 %v284_v33, %v284_v33 }
  0xf3   : > { %v317_v35 = vsel %vm309_vm3, %v299_v34, 0  ;;  %v206_v34 = vld [vmem:[%s716_s3] sm:$0x7] }
  0xf4   : > { %348 = vmatpush.bf16.msra.mxu2 %v317_v35  ;;  %v359_v9 = vperm.slane %v206_v34, 0 }
  0xf5   : > { %v498_v36 = vpop.permute.xlu2 %497 }
  0xf6   : > { %v500_v37 = vunpack.i.h.bf16 %v498_v36  ;;  %v499_v38 = vunpack.i.l.bf16 %v498_v36  ;;  %v360_v36 = vperm.slane %v206_v34, 1 }
  0xf8   : > { %v273_v39 = vsel %vm235_vm4, %v499_v38, %v500_v37 }
  0xf9   : > { %v296_v40 = vpack.c.bf16 %v228_v17, %v273_v39 }
  0xfb   : > { %349 = vmatpush.bf16.msra.mxu2 %v296_v40 }
  0xfd   : > { %v513_v43 = vpop.permute.xlu2 %512 }
  0xfe   : > { %v514_v46 = vunpack.i.l.bf16 %v513_v43  ;;  %v515_v61 = vunpack.i.h.bf16 %v513_v43 }
 0x100   : > { %v275_v56 = vsel %vm235_vm4, %v500_v37, %v514_v46  ;;  %v274_v57 = vsel %vm235_vm4, %v514_v46, %v499_v38  ;;  %v361_v38 = vperm.slane %v206_v34, 2 }
 0x101   : > { %v294_v3 = vpack.c.bf16 %v605_v18, %v275_v56  ;;  %v295_v4 = vpack.c.bf16 %v603_v16, %v274_v57 }
 0x104   : > { %v508_v44 = vpop.permute.xlu1 %507  ;;  %v503_v45 = vpop.permute.xlu0 %502 }
 0x105   : > { %v509_v47 = vunpack.i.l.bf16 %v508_v44  ;;  %v505_v48 = vunpack.i.h.bf16 %v503_v45  ;;  %v504_v49 = vunpack.i.l.bf16 %v503_v45  ;;  %v528_v60 = vpop.permute.xlu2 %527  ;;  %v510_v62 = vunpack.i.h.bf16 %v508_v44 }
 0x106   : > { %v529_v10 = vunpack.i.l.bf16 %v528_v60  ;;  %v530_v18 = vunpack.i.h.bf16 %v528_v60 }
 0x107   : > { %v266_v50 = vsel %vm245_vm2, %v509_v47, %v505_v48  ;;  %v283_v51 = vsel %vm245_vm2, %v494_v32, %v504_v49  ;;  %v282_v52 = vsel %vm245_vm2, %v504_v49, %v495_v31 }
 0x108   : > { %v293_v53 = vpack.c.bf16 %v266_v50, %v591_v5  ;;  %v297_v54 = vpack.c.bf16 %v283_v51, %v283_v51  ;;  %v298_v55 = vpack.c.bf16 %v282_v52, %v282_v52 }
 0x10a   : > { %350 = vmatpush.bf16.msra.mxu2 %v293_v53  ;;  %v311_v58 = vsel %vm309_vm3, %v297_v54, 0  ;;  %v314_v59 = vsel %vm309_vm3, %v298_v55, 0  ;;  %v396_v55 = vld [vmem:[%s197_s8] sm:$0x3f] }
 0x10b   : > { %322 = vmatpush.bf16.msra.mxu0 %v311_v58  ;;  %335 = vmatpush.bf16.msra.mxu1 %v314_v59 }
 0x10c   : > { %v523_v63 = vpop.permute.xlu1 %522  ;;  %v518_v0 = vpop.permute.xlu0 %517 }
 0x10d   : > { %v525_v5 = vunpack.i.h.bf16 %v523_v63  ;;  %v524_v6 = vunpack.i.l.bf16 %v523_v63  ;;  %v520_v7 = vunpack.i.h.bf16 %v518_v0  ;;  %v519_v8 = vunpack.i.l.bf16 %v518_v0  ;;  %v303_v35 = vpop.permute.xlu2 %302 }
 0x10f   : > { %323 = vmatpush.bf16.msra.mxu0 %v294_v3  ;;  %336 = vmatpush.bf16.msra.mxu1 %v295_v4  ;;  %v248_v11 = vsel %vm245_vm2, %v519_v8, %v510_v62  ;;  %v255_v12 = vsel %vm235_vm4, %v515_v61, %v524_v6  ;;  %v265_v13 = vsel %vm245_vm2, %v505_v48, %v520_v7 }
 0x110   : > { %v290_v14 = vpack.c.bf16 %v255_v12, %v248_v11  ;;  %v291_v17 = vpack.c.bf16 %v265_v13, %v585_v1  ;;  %v264_v16 = vsel %vm245_vm2, %v520_v7, %v509_v47  ;;  %v236_v20 = vsel %vm235_vm4, %v525_v5, %v529_v10 }
 0x111   : > { %v292_v19 = vpack.c.bf16 %v264_v16, %v587_v2  ;;  %v287_v25 = vpack.c.bf16 %v614_v23, %v236_v20  ;;  %v257_v27 = vsel %vm235_vm4, %v524_v6, %v530_v18  ;;  %v256_v2 = vsel %vm235_vm4, %v530_v18, %v515_v61 }
 0x112   : > { %351 = vmatpush.bf16.msra.mxu2 %v290_v14 }
 0x113   : > { %324 = vmatpush.bf16.msra.mxu0 %v291_v17  ;;  %337 = vmatpush.bf16.msra.mxu1 %v292_v19 }
 0x114   : > { %v230_v21 = vpop.permute.xlu1 %229  ;;  %v242_v22 = vpop.permute.xlu0 %241 }
 0x115   : > { %v246_v26 = vsel %vm245_vm2, %v242_v22, %v519_v8  ;;  %v247_v1 = vsel %vm245_vm2, %v510_v62, %v242_v22  ;;  %v237_v23 = vsel %vm235_vm4, %v230_v21, %v525_v5  ;;  %v238_v31 = vsel %vm235_vm4, %v529_v10, %v230_v21 }
 0x116   : > { %352 = vmatpush.bf16.msra.mxu2 %v287_v25  ;;  %v288_v28 = vpack.c.bf16 %v257_v27, %v247_v1  ;;  %v289_v29 = vpack.c.bf16 %v256_v2, %v246_v26  ;;  %v285_v32 = vpack.c.bf16 %v601_v15, %v238_v31  ;;  %v286_v33 = vpack.c.bf16 %v618_v24, %v237_v23 }
 0x118   : > { %325 = vmatpush.bf16.msra.mxu0 %v288_v28  ;;  %338 = vmatpush.bf16.msra.mxu1 %v289_v29 }
 0x119   : > { %463 = vmatmul.msk.bf16.vlgmr.msra.gmra.mxu2 %vm305_vm5, %v204_v30 }
 0x11c   : > { %326 = vmatpush.bf16.msra.mxu0 %v285_v32  ;;  %339 = vmatpush.bf16.msra.mxu1 %v286_v33 }
 0x11f   : > { %461 = vmatmul.msk.bf16.vlgmr.msra.gmra.mxu0 %vm305_vm5, %v204_v30  ;;  %462 = vmatmul.msk.bf16.vlgmr.msra.gmra.mxu1 %vm305_vm5, %v204_v30 }
 0x19c   : > { %v328_v37 = vpop.f32.mrf.mxu0  ;;  %v341_v15 = vpop.f32.mrf.mxu1 }
 0x19d   : > { %v329_v24 = vadd.f32 %v328_v37, %v303_v35  ;;  %v342_v39 = vadd.f32 %v341_v15, %v303_v35  ;;  %v354_v41 = vpop.f32.mrf.mxu2 }
 0x19e   : > { %v355_v43 = vadd.f32 %v354_v41, %v303_v35 }
 0x19f   : > { %v365_v44 = vmul.f32 %v359_v9, %v329_v24  ;;  %v366_v45 = vmul.f32 %v360_v36, %v342_v39 }
 0x1a0   : > { %v367_v46 = vmul.f32 %v361_v38, %v355_v43 }
 0x1a1   : > { %v368_v47 = vpack.c.bf16 %v366_v45, %v365_v44 }
 0x1a2   : > { %v369_v48 = vpack.c.bf16 %v367_v46, %v367_v46 }
 0x1a3   : > { %v372_v49 = vrot.slane %v368_v47, 2 }
 0x1a4   : > { %v373_v50 = vrot.slane %v369_v48, 4  ;;  %v374_v51 = vrot.slane %v369_v48, 6  ;;  %v330_v52 = vpop.f32.mrf.mxu0  ;;  %v343_v53 = vpop.f32.mrf.mxu1 }
 0x1a5   : > { %v378_v54 = vsel %vm375_vm6, %v368_v47, %v372_v49  ;;  %v356_v56 = vpop.f32.mrf.mxu2 }
 0x1a6   : > { %v382_v57 = vsel %vm379_vm12, %v373_v50, %v374_v51 }
 0x1a7   : > { %v383_v58 = vsel %vm309_vm3, %v378_v54, %v382_v57 }
 0x1a8   : > { %v397_v59 = vsel %vm395_vm0, %v383_v58, %v396_v55 }
 0x1a9   : > { %398 = vst [vmem:[%s197_s8] sm:$0x3f] %v397_v59 }
 0x1aa PF: > { %s14_s15 = sadd.s32 1, %s539_s15  }
 0x1ab   : > { %p11_p4 = scmp.ge.s32.totalorder %s14_s15, 4  }
 0x1ad   :  { %13 = sbr.rel (!%p11_p4) target bundleno = 1 (0x1), region = 66 }

</bundles_post_ra>
